<compile_context>
chip_gen: v5e
topology: v5e:2x2
jax: 0.10.0
libtpu: 0.0.40
codegen_flags: <defaults>
</compile_context>

<pallas_src>
import jax
import jax.numpy as jnp
from jax.experimental import pallas as pl
from jax.experimental.pallas import tpu as pltpu


def _mlp_kernel(x_ref, w1_ref, b1_ref, w2_ref, b2_ref, w3_ref, b3_ref, o_ref):
    """Fused 3-layer MLP on one lane-dense batch tile.

    x_ref : (d+1, TILE_B)      w*_ref : (out, in)      b*_ref : (out, 1)
    o_ref : (2, TILE_B)
    """
    x = x_ref[...]  # (d+1, TILE_B), batch on lanes

    h1 = jnp.dot(w1_ref[...], x, preferred_element_type=jnp.float32) + b1_ref[...]
    h1 = jnp.maximum(h1, 0.0)  # ReLU (dense VPU, all 128 lanes useful)

    h2 = jnp.dot(w2_ref[...], h1, preferred_element_type=jnp.float32) + b2_ref[...]
    h2 = jnp.maximum(h2, 0.0)

    o_ref[...] = jnp.dot(w3_ref[...], h2, preferred_element_type=jnp.float32) + b3_ref[...]


def _round_up(x, m):
    return ((x + m - 1) // m) * m


def _pick_tile_b(B, max_tile_b):
    """Lane-dense batch tile: multiple of 128, large enough to amortize the
    per-grid-step overhead, small enough for VMEM, and (when B allows) giving
    at least 2 grid tiles so v7x's two TensorCores both get work."""
    t = min(int(max_tile_b), _round_up(B, 128))
    t = max(128, _round_up(t, 128))
    while t > 128 and -(-B // t) < 2:        # keep >= 2 tiles when possible
        t = max(128, _round_up(t // 2, 128))
    return t


def target_nn_forward_lanes(xt, params, *, max_tile_b=32768):
    """Fast path: x already batch-on-lanes.

    xt     : (d+1, B) float32  (batch on the last / lane axis)
    returns: (2, B) float32 logits (batch on lanes)
    """
    feat, B = xt.shape
    tile_b = _pick_tile_b(B, max_tile_b)
    n_tiles = pl.cdiv(B, tile_b)

    w1, b1 = params["w1"], params["b1"]
    w2, b2 = params["w2"], params["b2"]
    w3, b3 = params["w3"], params["b3"]

    const = lambda i: (0, 0)  # weights/biases resident in VMEM across grid steps

    # Per-step f32 VMEM: double-buffered x/out tiles + h1/h2 intermediates (+slack).
    vmem_bytes = 4 * tile_b * (2 * feat + 2 * 2 + 20 + 25) + (2 << 20)
    vmem_limit = None
    if vmem_bytes > (14 << 20):  # above the v5e scoped-VMEM default -> ask explicitly
        vmem_limit = int(min(vmem_bytes + (8 << 20), 48 << 20))

    return pl.pallas_call(
        _mlp_kernel,
        out_shape=jax.ShapeDtypeStruct((2, B), jnp.float32),
        grid=(n_tiles,),
        in_specs=[
            pl.BlockSpec((feat, tile_b), lambda i: (0, i)),   # x tile (pipelined, ragged last tile OK)
            pl.BlockSpec(w1.shape, const),
            pl.BlockSpec(b1.shape, const),
            pl.BlockSpec(w2.shape, const),
            pl.BlockSpec(b2.shape, const),
            pl.BlockSpec(w3.shape, const),
            pl.BlockSpec(b3.shape, const),
        ],
        out_specs=pl.BlockSpec((2, tile_b), lambda i: (0, i)),
        compiler_params=pltpu.CompilerParams(
            dimension_semantics=("parallel",),  # lets the 2 v7x TCs split the batch tiles
            vmem_limit_bytes=vmem_limit,
        ),
    )(xt.astype(jnp.float32), w1, b1, w2, b2, w3, b3)


def target_nn_forward(x, params, *, max_tile_b=32768, min_pallas_batch=2048):
    """PyTorch-facing entry point.

    x      : (B, d+1) float32
    params : dict with w1 (20, d+1), b1 (20, 1), w2 (25, 20), b2 (25, 1),
                       w3 (2, 25),  b3 (2, 1)   (weights as (out, in), like nn.Linear)
    returns: (B, 2) float32 logits
    """
    B, _ = x.shape
    if B < min_pallas_batch:
        # Small-batch fallback: the pallas_call launch + transpose cost exceeds
        # the whole tiny MLP; XLA fuses this just fine.
        return reference_forward(x.astype(jnp.float32), params)

    # One materialized transpose to get batch onto lanes.  Producers that can
    # keep x as (feat, B) should call target_nn_forward_lanes directly and skip
    # this extra HBM pass over the dominant input.
    out_t = target_nn_forward_lanes(jnp.transpose(x), params, max_tile_b=max_tile_b)
    return jnp.transpose(out_t)  # back to (B, 2)


def init_params(key, d):
    """Deterministic init mimicking torch.nn.Linear default (U[-1/sqrt(fan_in), 1/sqrt(fan_in)]).

    Weights stored as (out_features, in_features) like nn.Linear; biases as (out, 1) columns.
    """
    dims = [(d + 1, 20), (20, 25), (25, 2)]
    params = {}
    for i, (fan_in, fan_out) in enumerate(dims, start=1):
        key, kw, kb = jax.random.split(key, 3)
        bound = 1.0 / jnp.sqrt(jnp.float32(fan_in))
        params[f"w{i}"] = jax.random.uniform(
            kw, (fan_out, fan_in), jnp.float32, minval=-bound, maxval=bound)
        params[f"b{i}"] = jax.random.uniform(
            kb, (fan_out, 1), jnp.float32, minval=-bound, maxval=bound)
    return params


def reference_forward(x, params):
    """Plain-JAX reference for correctness checking (also the small-batch fallback)."""
    h1 = jnp.maximum(x @ params["w1"].T + params["b1"].T, 0.0)
    h2 = jnp.maximum(h1 @ params["w2"].T + params["b2"].T, 0.0)
    return h2 @ params["w3"].T + params["b3"].T


if __name__ == "__main__":
    d = 7            # state dimension -> input feature dim = d + 1 = 8

    key = jax.random.PRNGKey(0)
    key, kx = jax.random.split(key)
    params = init_params(key, d)

    # 1) Small PyTorch-facing batch (B=8): goes through the plain-JAX fallback.
    x_small = jax.random.normal(kx, (8, d + 1), dtype=jnp.float32)
    out_small = jax.block_until_ready(target_nn_forward(x_small, params))
    assert out_small.shape == (8, 2), out_small.shape
    assert jnp.allclose(out_small, reference_forward(x_small, params), atol=1e-5, rtol=1e-5)

    # 2) Larger ragged batch: exercises the Pallas kernel (>= 2 lane tiles,
    #    ragged last tile, weights resident in VMEM).
    key, kx2 = jax.random.split(key)
    B = 4096 + 37
    x_big = jax.random.normal(kx2, (B, d + 1), dtype=jnp.float32)
    out_big = jax.block_until_ready(target_nn_forward(x_big, params))
    ref_big = reference_forward(x_big, params)
    assert out_big.shape == (B, 2), out_big.shape
    assert jnp.allclose(out_big, ref_big, atol=1e-4, rtol=1e-4), "Pallas output mismatch vs reference"

    # 3) Lane-major fast path (no wrapper transpose inside the call).
    out_t = jax.block_until_ready(target_nn_forward_lanes(jnp.transpose(x_big), params))
    assert out_t.shape == (2, B), out_t.shape
    assert jnp.allclose(out_t, ref_big.T, atol=1e-4, rtol=1e-4), "lane-major path mismatch vs reference"

    print("KERNEL_OK")
</pallas_src>

<mosaic_0001>
module attributes {stable_mosaic.version = 11 : i64} {
  func.func @_mlp_kernel(%arg0: i32, %arg1: memref<8x2176xf32, #tpu.memory_space<vmem>>, %arg2: memref<20x8xf32, #tpu.memory_space<vmem>>, %arg3: memref<20x1xf32, #tpu.memory_space<vmem>>, %arg4: memref<25x20xf32, #tpu.memory_space<vmem>>, %arg5: memref<25x1xf32, #tpu.memory_space<vmem>>, %arg6: memref<2x25xf32, #tpu.memory_space<vmem>>, %arg7: memref<2x1xf32, #tpu.memory_space<vmem>>, %arg8: memref<2x2176xf32, #tpu.memory_space<vmem>>) attributes {dimension_semantics = [#tpu.dimension_semantics<parallel>], iteration_bounds = array<i64: 2>, scalar_prefetch = 0 : i64, scratch_operands = 0 : i64, tpu.core_type = #tpu.core_type<tc>, window_params = [{transform_indices = @transform_0, window_bounds = array<i64: 8, 2176>}, {pipeline_mode = #tpu.pipeline_mode<synchronous>, transform_indices = @transform_1, window_bounds = array<i64: 20, 8>}, {pipeline_mode = #tpu.pipeline_mode<synchronous>, transform_indices = @transform_2, window_bounds = array<i64: 20, 1>}, {pipeline_mode = #tpu.pipeline_mode<synchronous>, transform_indices = @transform_3, window_bounds = array<i64: 25, 20>}, {pipeline_mode = #tpu.pipeline_mode<synchronous>, transform_indices = @transform_4, window_bounds = array<i64: 25, 1>}, {pipeline_mode = #tpu.pipeline_mode<synchronous>, transform_indices = @transform_5, window_bounds = array<i64: 2, 25>}, {pipeline_mode = #tpu.pipeline_mode<synchronous>, transform_indices = @transform_6, window_bounds = array<i64: 2, 1>}, {transform_indices = @transform_7, window_bounds = array<i64: 2, 2176>}]} {
    %c0 = arith.constant 0 : index
    %c0_0 = arith.constant 0 : index
    %0 = vector.load %arg1[%c0, %c0_0] : memref<8x2176xf32, #tpu.memory_space<vmem>>, vector<8x2176xf32>
    %c0_1 = arith.constant 0 : index
    %c0_2 = arith.constant 0 : index
    %1 = vector.load %arg2[%c0_1, %c0_2] : memref<20x8xf32, #tpu.memory_space<vmem>>, vector<20x8xf32>
    %cst = arith.constant dense<0.000000e+00> : vector<20x2176xf32>
    %2 = tpu.matmul %1, %0, %cst {dimension_numbers = #tpu.dot_dimension_numbers<[1], [0], [0], [1], [0, 0, 1, 1], [], []>} : vector<20x8xf32>, vector<8x2176xf32>, vector<20x2176xf32> -> vector<20x2176xf32>
    %c0_3 = arith.constant 0 : index
    %c0_4 = arith.constant 0 : index
    %3 = vector.load %arg3[%c0_3, %c0_4] : memref<20x1xf32, #tpu.memory_space<vmem>>, vector<20x1xf32>
    %4 = vector.broadcast %3 : vector<20x1xf32> to vector<20x2176xf32>
    %5 = arith.addf %2, %4 : vector<20x2176xf32>
    %cst_5 = arith.constant 0.000000e+00 : f32
    %6 = vector.broadcast %cst_5 : f32 to vector<20x2176xf32>
    %7 = arith.maximumf %5, %6 : vector<20x2176xf32>
    %c0_6 = arith.constant 0 : index
    %c0_7 = arith.constant 0 : index
    %8 = vector.load %arg4[%c0_6, %c0_7] : memref<25x20xf32, #tpu.memory_space<vmem>>, vector<25x20xf32>
    %cst_8 = arith.constant dense<0.000000e+00> : vector<25x2176xf32>
    %9 = tpu.matmul %8, %7, %cst_8 {dimension_numbers = #tpu.dot_dimension_numbers<[1], [0], [0], [1], [0, 0, 1, 1], [], []>} : vector<25x20xf32>, vector<20x2176xf32>, vector<25x2176xf32> -> vector<25x2176xf32>
    %c0_9 = arith.constant 0 : index
    %c0_10 = arith.constant 0 : index
    %10 = vector.load %arg5[%c0_9, %c0_10] : memref<25x1xf32, #tpu.memory_space<vmem>>, vector<25x1xf32>
    %11 = vector.broadcast %10 : vector<25x1xf32> to vector<25x2176xf32>
    %12 = arith.addf %9, %11 : vector<25x2176xf32>
    %cst_11 = arith.constant 0.000000e+00 : f32
    %13 = vector.broadcast %cst_11 : f32 to vector<25x2176xf32>
    %14 = arith.maximumf %12, %13 : vector<25x2176xf32>
    %c0_12 = arith.constant 0 : index
    %c0_13 = arith.constant 0 : index
    %15 = vector.load %arg6[%c0_12, %c0_13] : memref<2x25xf32, #tpu.memory_space<vmem>>, vector<2x25xf32>
    %cst_14 = arith.constant dense<0.000000e+00> : vector<2x2176xf32>
    %16 = tpu.matmul %15, %14, %cst_14 {dimension_numbers = #tpu.dot_dimension_numbers<[1], [0], [0], [1], [0, 0, 1, 1], [], []>} : vector<2x25xf32>, vector<25x2176xf32>, vector<2x2176xf32> -> vector<2x2176xf32>
    %c0_15 = arith.constant 0 : index
    %c0_16 = arith.constant 0 : index
    %17 = vector.load %arg7[%c0_15, %c0_16] : memref<2x1xf32, #tpu.memory_space<vmem>>, vector<2x1xf32>
    %18 = vector.broadcast %17 : vector<2x1xf32> to vector<2x2176xf32>
    %19 = arith.addf %16, %18 : vector<2x2176xf32>
    %c0_17 = arith.constant 0 : index
    %c0_18 = arith.constant 0 : index
    %20 = vector.load %arg8[%c0_17, %c0_18] : memref<2x2176xf32, #tpu.memory_space<vmem>>, vector<2x2176xf32>
    tpu.vector_store %arg8[%c0_17, %c0_18], %19 {strides = array<i32>} : memref<2x2176xf32, #tpu.memory_space<vmem>>, vector<2x2176xf32>,
    return
  }
  func.func @transform_0(%arg0: i32) -> (i32, i32) {
    %c0_i32 = arith.constant 0 : i32
    %c0_i32_0 = arith.constant 0 : i32
    return %c0_i32, %arg0 : i32, i32
  }
  func.func @transform_1(%arg0: i32) -> (i32, i32) {
    %c0_i32 = arith.constant 0 : i32
    %c0_i32_0 = arith.constant 0 : i32
    %c0_i32_1 = arith.constant 0 : i32
    return %c0_i32, %c0_i32_0 : i32, i32
  }
  func.func @transform_2(%arg0: i32) -> (i32, i32) {
    %c0_i32 = arith.constant 0 : i32
    %c0_i32_0 = arith.constant 0 : i32
    %c0_i32_1 = arith.constant 0 : i32
    return %c0_i32, %c0_i32_0 : i32, i32
  }
  func.func @transform_3(%arg0: i32) -> (i32, i32) {
    %c0_i32 = arith.constant 0 : i32
    %c0_i32_0 = arith.constant 0 : i32
    %c0_i32_1 = arith.constant 0 : i32
    return %c0_i32, %c0_i32_0 : i32, i32
  }
  func.func @transform_4(%arg0: i32) -> (i32, i32) {
    %c0_i32 = arith.constant 0 : i32
    %c0_i32_0 = arith.constant 0 : i32
    %c0_i32_1 = arith.constant 0 : i32
    return %c0_i32, %c0_i32_0 : i32, i32
  }
  func.func @transform_5(%arg0: i32) -> (i32, i32) {
    %c0_i32 = arith.constant 0 : i32
    %c0_i32_0 = arith.constant 0 : i32
    %c0_i32_1 = arith.constant 0 : i32
    return %c0_i32, %c0_i32_0 : i32, i32
  }
  func.func @transform_6(%arg0: i32) -> (i32, i32) {
    %c0_i32 = arith.constant 0 : i32
    %c0_i32_0 = arith.constant 0 : i32
    %c0_i32_1 = arith.constant 0 : i32
    return %c0_i32, %c0_i32_0 : i32, i32
  }
  func.func @transform_7(%arg0: i32) -> (i32, i32) {
    %c0_i32 = arith.constant 0 : i32
    %c0_i32_0 = arith.constant 0 : i32
    return %c0_i32, %arg0 : i32, i32
  }
}

</mosaic_0001>

<bundles_post_ra>
// kernel: tpu_custom_call.1
= control target key start
LH: loop header
LB: loop body
LE: loop exit
PB: predicated region body
PF: predicated region fallthrough
CT: control target
= control target key end

     0   :  { %12 = vsyncpa [#allocation3], 0  ;;  %s3169_s0 = inlined_call_operand.hbm [shape: f32[8,4133], index: 0, kind: input, shape index: {}]   ;;  %s3170_s1 = inlined_call_operand.vmem [shape: f32[20,8], index: 1, kind: input, shape index: {}]   ;;  %s3171_s2 = inlined_call_operand.vmem [shape: f32[20,1], index: 2, kind: input, shape index: {}]   ;;  %s3172_s3 = inlined_call_operand.vmem [shape: f32[25,20], index: 3, kind: input, shape index: {}]   ;;  %s3173_s4 = inlined_call_operand.vmem [shape: f32[25,1], index: 4, kind: input, shape index: {}]   ;;  %s3174_s5 = inlined_call_operand.vmem [shape: f32[2,25], index: 5, kind: input, shape index: {}]   ;;  %s3175_s6 = inlined_call_operand.vmem [shape: f32[2,1], index: 6, kind: input, shape index: {}]   ;;  %s3176_s7 = inlined_call_operand.hbm [shape: f32[2,4133], index: 7, kind: output, shape index: {}]  }
   0x1   :  { %14 = vsyncpa [#allocation3 + $0x1], 0 }
   0x2   :  { %15 = vsyncpa [#allocation4], 0 }
   0x3   :  { %17 = vsyncpa [#allocation4 + $0x1], 0  ;;  %s2452_s24 = smov 0   ;;  %s2454_s25 = smov 0  }
   0x4   :  { %s2456_s26 = smov 0   ;;  %s2458_s27 = smov 0  }
   0x5 LB: > { %3182 = sst [smem:[#allocation8_spill]] %s2403_s26  ;;  %s2473_s28 = sadd.s32 4294967295, %s2407_s27   ;;  %s2407_s27 = sphi %s2458_s27, %s3193_s27   ;;  %s2403_s26 = sphi %s2456_s26, %s3195_s26   ;;  %s2399_s25 = sphi %s2454_s25, %s3197_s25   ;;  %s2395_s24 = sphi %s2452_s24, %s3196_s24  }
   0x6   : > { %s2057_s29 = sadd.s32 4294967294, %s2407_s27   ;;  %s2477_s30 = sadd.s32 1, %s2407_s27  }
   0x7   : > { %3183 = sst [smem:[#allocation9_spill]] %s2477_s30  ;;  %s30_s8 = sadd.s32 1, %s2403_s26 }
   0x8   : > { %s27_s9 = ssub.s32 %s2407_s27, %s2477_s30  ;;  %p37_p0 = scmp.ne.s32.totalorder %s2403_s26, %s2399_s25 }
   0x9   : > { %p28_p1 = scmp.eq.s32.totalorder %s27_s9, 0  ;;  %p38_p2 = scmp.eq.s32.totalorder %s2407_s27, 0 }
   0xa   : > { %p43_p3 = scmp.ne.s32.totalorder %s2399_s25, %s2395_s24  ;;  %p44_p4 = scmp.eq.s32.totalorder %s2473_s28, 0 }
   0xb   : > { %s2489_s10 = scalar_select %p28_p1, %s2403_s26, %s30_s8  }
   0xc   : > { %p39_p5 = por %p38_p2, %p37_p0  ;;  %p2491_p6 = por %p44_p4, %p43_p3 }
   0xd   : > { %3184 = sst [smem:[#allocation10_spill]] %s2489_s10  ;;  %p193_p7 = scmp.eq.s32.totalorder %s2473_s28, 1 }
   0xe   : > { %p199_p8 = scmp.eq.s32.totalorder %s2057_s29, 1  ;;  %p3181_p11 = scmp.ge.s32.totalorder %s2407_s27, 2 }
   0xf   : > { %p2496_p9 = por %p193_p7, %p37_p0 }
  0x10   : > { %p2500_p10 = por %p199_p8, %p43_p3  ;;  %233 = sbr.rel (%p3181_p11) target bundleno = 58 (0x3a), region = 40 }
  0x12   : > { %s3187_s13 = scalar_select %p2500_p10, 1, 0 }
  0x14   : > { %3188 = sst [smem:[#allocation11_spill]] %s3187_s13 }
  0x15   : > { %236 = sbr.rel (!%p39_p5) target bundleno = 58 (0x3a), region = 44  ;;  %s237_s14 = sand.u32 (%p39_p5), 1, %s2403_s26  }
  0x16   : > { %s242_s15 = smul.u32 (%p39_p5), 17, %s2407_s27  ;;  %s2512_s21 = scalar_lea.sflag (%p39_p5), [#allocation3], %s237_s14 }
  0x17   : > { %s2245_s16 = smul.u32 (%p39_p5), 136, %s237_s14 }
  0x18   : > { %s243_s17 = ssub.s32 (%p39_p5), 33, %s242_s15 }
  0x19   : > { %p244_p12 = scmp.lt.s32.totalorder (%p39_p5), %s243_s17, 17  ;;  %s241_s22 = scalar_lea.vmem (%p39_p5), [#allocation2], %s2245_s16 }
  0x1b   : > { %s3199_s17 = smov (!%p244_p12, %s243_s17), 17 }
  0x1c   : > { %s2060_s18 = sshll.u32 %s3199_s17, 3 }
  0x1d   : > { %s247_s19 = ssub.s32 136, %s2060_s18 }
  0x1e   : > { %s248_s20 = sshll.u32 %s247_s19, 4 }
  0x1f   : > { %249 = vsyncadd %s2512_s21, %s248_s20  ;;  %p2515_p13 = scmp.ne.s32.totalorder %s2060_s18, 0  ;;  %s2243_s29 = smul.u32 136, %s2407_s27 }
  0x20   : > { %s2064_s8 = sshll.u32 %s3199_s17, 7  ;;  %s2521_s9 = sshll.u32 %s241_s22, 4  ;;  %s258_s9 = int_to_ptr.vmem [resolvable:$true] %s2521_s9 }
  0x21   : > { %s252_s14 = scalar_lea.hbm %s3169_s0, %s2243_s29  ;;  %s2293_s18 = sshrl.u32 %s2064_s8, 4 }
  0x22   : > { %s255_s16 = sshll.u32 %s252_s14, 4  ;;  %s2302_s30 = scalar_lea.hbm %s3169_s0, 264  ;;  %s256_s16 = int_to_ptr.hbm [resolvable:$true] %s255_s16 }
  0x23   : > { %s2291_s19 = sshra.s32 %s256_s16, 4  ;;  %s2292_s19 = int_to_ptr.hbm [resolvable:$true] %s2291_s19 }
  0x24   : > { %s2298_s20 = scalar_lea.hbm %s2292_s19, %s2293_s18  ;;  %p2303_p3 = scmp.lt.s32.totalorder %s2292_s19, %s3169_s0 }
  0x25   : > { %p2299_p0 = scmp.ne.s32.totalorder %s2292_s19, %s2298_s20  ;;  %p2304_p4 = scmp.lt.s32.totalorder %s2302_s30, %s2298_s20 }
  0x27   : > { %p2300_p1 = pnand %p2299_p0, %p2515_p13  ;;  %p2305_p5 = por %p2304_p4, %p2303_p3 }
  0x29   : > { %p2301_p2 = pneg %p2300_p1 }
  0x2b   : > { %p2306_p7 = pnand %p2305_p5, %p2301_p2 }
  0x2d   : > { %2309 = shalt.err (!%p2306_p7)
}
  0x2e   : > { %s2310_s29 = sshra.s32 %s258_s9, 4  ;;  %s2409_s26 = smov [#allocation2]   ;;  %s2311_s29 = int_to_ptr.vmem [resolvable:$true] %s2310_s29 }
  0x2f   : > { %s2317_s15 = scalar_lea.vmem %s2311_s29, %s2293_s18  ;;  %s2321_s14 = scalar_lea.vmem %s2409_s26, 272 }
  0x30   : > { %p2318_p8 = scmp.ne.s32.totalorder %s2311_s29, %s2317_s15  ;;  %p2323_p1 = scmp.lt.s32.totalorder %s2321_s14, %s2317_s15 }
  0x32   : > { %p2319_p12 = pnand %p2318_p8, %p2515_p13 }
  0x34   : > { %p2320_p0 = pneg %p2319_p12 }
  0x36   : > { %p2325_p11 = pnand %p2323_p1, %p2320_p0 }
  0x38   : > { %2328 = shalt.err (!%p2325_p11)
}
  0x39   : > { %260 = dma.hbm_to_vmem [thread:$0]  (%p2515_p13), %s256_s16, %s2064_s8, %s258_s9, %s2512_s21  }
  0x3a PF: > { %p2065_p2 = scmp.ge.s32.totalorder %s2407_s27, 1  ;;  %p262_p3 = scmp.lt.s32.totalorder %s2407_s27, 3 }
  0x3c   : > { %p263_p4 = pnand %p2065_p2, %p262_p3 }
  0x3d   : > { %s2551_s30 = sand.u32 (!%p263_p4), 1, %s2399_s25  }
  0x3e   : > { %266 = sbr.rel (%p263_p4) target bundleno = 678 (0x2a6), region = 48  ;;  %s269_s23 = scalar_lea.sflag (!%p263_p4), [#allocation3], %s2551_s30 }
  0x3f   : > { %s2246_s13 = smul.u32 (!%p263_p4), 136, %s2551_s30 }
  0x41   : > { %s2555_s19 = scalar_lea.vmem (!%p263_p4), [#allocation2], %s2246_s13 }
  0x43   : > { %2386 = dma.done.wait (%p2491_p6), %s269_s23, 2176  }
  0x44   : > { %2388 = vsyncadd (%p2491_p6), %s269_s23, 4294965120  ;;  %v2410_v0 = vmov 0   ;;  %v314_v1 = vld [vmem:[%s2555_s19] sm:$0xff]  ;;  %v315_v2 = vld [vmem:[%s2555_s19 + $0x8] sm:$0xff]  ;;  %vm352_vm0 = vcmask 64512   ;;  %vm896_vm1 = vcmask 1043456  }
  0x45   : > { %2289 = vset.pattern.permute.xlu1 %v2410_v0  ;;  %2288 = vset.pattern.permute.xlu0 %v2410_v0  ;;  %v316_v3 = vld [vmem:[%s2555_s19 + $0x10] sm:$0xff]  ;;  %v317_v4 = vld [vmem:[%s2555_s19 + $0x18] sm:$0xff]  ;;  %v318_v8 = vld [vmem:[%s2555_s19 + $0x20] sm:$0xff]  ;;  %vm883_vm2 = vcmask 162816   ;;  %vm1520_vm3 = vcmask 1040384   ;;  %vm1516_vm4 = vcmask 203776  }
  0x46   : > { %2290 = vset.pattern.permute.xlu2 %v2410_v0  ;;  %377 = vmatpush.msra.mxu0 %v314_v1  ;;  %v2568_v5 = vld [vmem:[%s3170_s1] sm:$0xff]  ;;  %v336_v6 = vld [vmem:[%s3171_s2 + $0x10] sm:$0xf]  ;;  %v2591_v12 = vld [vmem:[%s3170_s1 + $0x8] sm:$0xff]  ;;  %s2247_s23 = smul.u32 34, %s2551_s30  ;;  %vm1940_vm5 = vcmask 1041408  }
  0x47   : > { %403 = vmatpush.msra.mxu1 %v315_v2  ;;  %429 = vmatpush.msra.mxu2 %v316_v3  ;;  %v334_v7 = vld [vmem:[%s3171_s2] sm:$0xff]  ;;  %v319_v9 = vld [vmem:[%s2555_s19 + $0x28] sm:$0xff]  ;;  %v320_v10 = vld [vmem:[%s2555_s19 + $0x30] sm:$0xff]  ;;  %vm1942_vm6 = vcmask 1045508   ;;  %s1964_s17 = scalar_lea.sflag [#allocation4], %s2551_s30 }
  0x48   : > { %455 = vmatpush.msra.mxu3 %v317_v4  ;;  %2066 = vmatmul.msk.f32.vlgmr.msra.gmra.mxu0 %vm352_vm0, %v2568_v5  ;;  %v321_v11 = vld [vmem:[%s2555_s19 + $0x38] sm:$0xff]  ;;  %v335_v13 = vld [vmem:[%s3171_s2 + $0x8] sm:$0xff]  ;;  %v324_v17 = vld [vmem:[%s2555_s19 + $0x50] sm:$0xff]  ;;  %s3081_s11 = scalar_lea.vmem [#allocation5], %s2247_s23 }
  0x49   : > { %2069 = vmatmul.msk.f32.vlgmr.msra.gmra.mxu1 %vm352_vm0, %v2568_v5  ;;  %2072 = vmatmul.msk.f32.vlgmr.msra.gmra.mxu2 %vm352_vm0, %v2568_v5  ;;  %v862_v14 = vld [vmem:[%s3173_s4 + $0x18] sm:$0x1]  ;;  %v322_v15 = vld [vmem:[%s2555_s19 + $0x40] sm:$0xff]  ;;  %v323_v16 = vld [vmem:[%s2555_s19 + $0x48] sm:$0xff] }
  0x4a   : > { %2075 = vmatmul.msk.f32.vlgmr.msra.gmra.mxu3 %vm352_vm0, %v2568_v5  ;;  %349 = vperm.xlu0 %2288, %v336_v6   ;;  %v325_v18 = vld [vmem:[%s2555_s19 + $0x58] sm:$0xff]  ;;  %v333_v19 = vld [vmem:[%s3170_s1 + $0x10] sm:$0xf]  ;;  %v326_v22 = vld [vmem:[%s2555_s19 + $0x60] sm:$0xff] }
  0x4b   : > { %339 = vperm.xlu1 %2289, %v334_v7   ;;  %481 = vmatpush.msrb.mxu0 %v318_v8  ;;  %v859_v20 = vld [vmem:[%s3173_s4] sm:$0xff]  ;;  %v327_v23 = vld [vmem:[%s2555_s19 + $0x68] sm:$0xff]  ;;  %v328_v24 = vld [vmem:[%s2555_s19 + $0x70] sm:$0xff] }
  0x4c   : > { %507 = vmatpush.msrb.mxu1 %v319_v9  ;;  %533 = vmatpush.msrb.mxu2 %v320_v10  ;;  %v1510_v21 = vld [vmem:[%s3175_s6] sm:$0x3]  ;;  %v861_v3 = vld [vmem:[%s3173_s4 + $0x10] sm:$0xff]  ;;  %v2731_v8 = vld [vmem:[%s3172_s3 + $0x8] sm:$0xff] }
  0x4d   : > { %559 = vmatpush.msrb.mxu3 %v321_v11  ;;  %585 = vmatpush.msra.mxu0 %v322_v15  ;;  %v329_v25 = vld [vmem:[%s2555_s19 + $0x78] sm:$0xff]  ;;  %v330_v26 = vld [vmem:[%s2555_s19 + $0x80] sm:$0xff]  ;;  %s1971_s19 = smul.u32 (%p2496_p9), 17, %s2473_s28 }
  0x4e   : > { %611 = vmatpush.msra.mxu1 %v323_v16  ;;  %637 = vmatpush.msra.mxu2 %v324_v17  ;;  %v2711_v54 = vld [vmem:[%s3172_s3] sm:$0xff]  ;;  %v860_v11 = vld [vmem:[%s3173_s4 + $0x8] sm:$0xff] }
  0x4f   : > { %663 = vmatpush.msra.mxu3 %v325_v18  ;;  %875 = vperm.xlu2 %2290, %v861_v3   ;;  %s1972_s21 = ssub.s32 (%p2496_p9), 33, %s1971_s19 }
  0x50   : > { %2067 = vmatmul.msk.f32.gmra.mxu0 %vm352_vm0, %v2591_v12  ;;  %p1973_p6 = scmp.lt.s32.totalorder (%p2496_p9), %s1972_s21, 17 }
  0x51   : > { %2070 = vmatmul.msk.f32.gmra.mxu1 %vm352_vm0, %v2591_v12  ;;  %2073 = vmatmul.msk.f32.gmra.mxu2 %vm352_vm0, %v2591_v12 }
  0x52   : > { %2076 = vmatmul.msk.f32.gmra.mxu3 %vm352_vm0, %v2591_v12  ;;  %344 = vperm.xlu0 %2288, %v335_v13  }
  0x53   : > { %880 = vperm.xlu1 %2289, %v862_v14   ;;  %v2747_v14 = vld [vmem:[%s3172_s3 + $0x10] sm:$0xff] }
  0x57   : > { %870 = vperm.xlu2 %2290, %v860_v11  }
  0x58   : > { %2068 = vmatmul.msk.f32.gmra.mxu0 %vm352_vm0, %v333_v19 }
  0x59   : > { %2071 = vmatmul.msk.f32.gmra.mxu1 %vm352_vm0, %v333_v19  ;;  %2074 = vmatmul.msk.f32.gmra.mxu2 %vm352_vm0, %v333_v19 }
  0x5a   : > { %2077 = vmatmul.msk.f32.gmra.mxu3 %vm352_vm0, %v333_v19  ;;  %865 = vperm.xlu0 %2288, %v859_v20  }
  0x5b   : > { %1513 = vperm.xlu1 %2289, %v1510_v21  }
  0x60   : > { %2078 = vmatmul.msk.f32.vlgmr.msrb.gmra.mxu0 %vm352_vm0, %v2568_v5 }
  0x61   : > { %2081 = vmatmul.msk.f32.vlgmr.msrb.gmra.mxu1 %vm352_vm0, %v2568_v5  ;;  %2084 = vmatmul.msk.f32.vlgmr.msrb.gmra.mxu2 %vm352_vm0, %v2568_v5 }
  0x62   : > { %2087 = vmatmul.msk.f32.vlgmr.msrb.gmra.mxu3 %vm352_vm0, %v2568_v5  ;;  %689 = vmatpush.msrb.mxu0 %v326_v22 }
  0x63   : > { %715 = vmatpush.msrb.mxu1 %v327_v23  ;;  %741 = vmatpush.msrb.mxu2 %v328_v24 }
  0x64   : > { %767 = vmatpush.msrb.mxu3 %v329_v25 }
  0x68   : > { %2079 = vmatmul.msk.f32.gmra.mxu0 %vm352_vm0, %v2591_v12 }
  0x69   : > { %2082 = vmatmul.msk.f32.gmra.mxu1 %vm352_vm0, %v2591_v12  ;;  %2085 = vmatmul.msk.f32.gmra.mxu2 %vm352_vm0, %v2591_v12 }
  0x6a   : > { %2088 = vmatmul.msk.f32.gmra.mxu3 %vm352_vm0, %v2591_v12 }
  0x70   : > { %2080 = vmatmul.msk.f32.gmra.mxu0 %vm352_vm0, %v333_v19 }
  0x71   : > { %2083 = vmatmul.msk.f32.gmra.mxu1 %vm352_vm0, %v333_v19  ;;  %2086 = vmatmul.msk.f32.gmra.mxu2 %vm352_vm0, %v333_v19 }
  0x72   : > { %2089 = vmatmul.msk.f32.gmra.mxu3 %vm352_vm0, %v333_v19 }
  0x78   : > { %2090 = vmatmul.msk.f32.vlgmr.msra.gmra.mxu0 %vm352_vm0, %v2568_v5 }
  0x79   : > { %2093 = vmatmul.msk.f32.vlgmr.msra.gmra.mxu1 %vm352_vm0, %v2568_v5  ;;  %2096 = vmatmul.msk.f32.vlgmr.msra.gmra.mxu2 %vm352_vm0, %v2568_v5 }
  0x7a   : > { %2099 = vmatmul.msk.f32.vlgmr.msra.gmra.mxu3 %vm352_vm0, %v2568_v5  ;;  %793 = vmatpush.msra.mxu0 %v330_v26 }
  0x80   : > { %2091 = vmatmul.msk.f32.gmra.mxu0 %vm352_vm0, %v2591_v12 }
  0x81   : > { %2094 = vmatmul.msk.f32.gmra.mxu1 %vm352_vm0, %v2591_v12  ;;  %2097 = vmatmul.msk.f32.gmra.mxu2 %vm352_vm0, %v2591_v12 }
  0x82   : > { %2100 = vmatmul.msk.f32.gmra.mxu3 %vm352_vm0, %v2591_v12 }
  0x88   : > { %2092 = vmatmul.msk.f32.gmra.mxu0 %vm352_vm0, %v333_v19 }
  0x89   : > { %2095 = vmatmul.msk.f32.gmra.mxu1 %vm352_vm0, %v333_v19  ;;  %2098 = vmatmul.msk.f32.gmra.mxu2 %vm352_vm0, %v333_v19 }
  0x8a   : > { %2101 = vmatmul.msk.f32.gmra.mxu3 %vm352_vm0, %v333_v19 }
  0x90   : > { %2102 = vmatmul.msk.f32.vlgmr.msrb.gmra.mxu0 %vm352_vm0, %v2568_v5 }
  0x91   : > { %2105 = vmatmul.msk.f32.vlgmr.msrb.gmra.mxu1 %vm352_vm0, %v2568_v5  ;;  %2108 = vmatmul.msk.f32.vlgmr.msrb.gmra.mxu2 %vm352_vm0, %v2568_v5 }
  0x92   : > { %2111 = vmatmul.msk.f32.vlgmr.msrb.gmra.mxu3 %vm352_vm0, %v2568_v5 }
  0x98   : > { %2103 = vmatmul.msk.f32.gmra.mxu0 %vm352_vm0, %v2591_v12 }
  0x99   : > { %2106 = vmatmul.msk.f32.gmra.mxu1 %vm352_vm0, %v2591_v12  ;;  %2109 = vmatmul.msk.f32.gmra.mxu2 %vm352_vm0, %v2591_v12 }
  0x9a   : > { %2112 = vmatmul.msk.f32.gmra.mxu3 %vm352_vm0, %v2591_v12 }
  0xa0   : > { %2104 = vmatmul.msk.f32.gmra.mxu0 %vm352_vm0, %v333_v19 }
  0xa1   : > { %2107 = vmatmul.msk.f32.gmra.mxu1 %vm352_vm0, %v333_v19  ;;  %2110 = vmatmul.msk.f32.gmra.mxu2 %vm352_vm0, %v333_v19 }
  0xa2   : > { %2113 = vmatmul.msk.f32.gmra.mxu3 %vm352_vm0, %v333_v19 }
  0xa8   : > { %2114 = vmatmul.msk.f32.vlgmr.msra.gmra.mxu0 %vm352_vm0, %v2568_v5 }
  0xb0   : > { %2115 = vmatmul.msk.f32.gmra.mxu0 %vm352_vm0, %v2591_v12 }
  0xb8   : > { %2116 = vmatmul.msk.f32.gmra.mxu0 %vm352_vm0, %v333_v19 }
  0xbc   : > { %v2694_v29 = vpop.permute.xlu0 %349 }
  0xbd   : > { %v2696_v34 = vpop.permute.xlu1 %339 }
  0xc4   : > { %v2698_v35 = vpop.permute.xlu0 %344 }
  0xc5   : > { %v379_v27 = vpop.f32.mrf.mxu0 }
  0xc6   : > { %v405_v28 = vpop.f32.mrf.mxu1  ;;  %v380_v45 = vadd.f32 %v379_v27, %v2696_v34 }
  0xc7   : > { %v406_v38 = vadd.f32 %v405_v28, %v2696_v34 }
  0xc8   : > { %v804_v51 = vmax.f32 %v380_v45, 0.0 }
  0xc9   : > { %v805_v48 = vmax.f32 %v406_v38, 0.0 }
  0xcc   : > { %v431_v30 = vpop.f32.mrf.mxu2 }
  0xcd   : > { %v457_v31 = vpop.f32.mrf.mxu3  ;;  %v382_v32 = vpop.f32.mrf.mxu0  ;;  %v432_v61 = vadd.f32 %v431_v30, %v2696_v34 }
  0xce   : > { %v408_v33 = vpop.f32.mrf.mxu1  ;;  %v383_v41 = vadd.f32 %v382_v32, %v2698_v35  ;;  %v458_v62 = vadd.f32 %v457_v31, %v2696_v34 }
  0xcf   : > { %v409_v42 = vadd.f32 %v408_v33, %v2698_v35  ;;  %v806_v4 = vmax.f32 %v432_v61, 0.0 }
  0xd0   : > { %v821_v49 = vmax.f32 %v383_v41, 0.0  ;;  %v807_v5 = vmax.f32 %v458_v62, 0.0 }
  0xd1   : > { %v822_v50 = vmax.f32 %v409_v42, 0.0 }
  0xd4   : > { %v434_v36 = vpop.f32.mrf.mxu2 }
  0xd5   : > { %v460_v37 = vpop.f32.mrf.mxu3  ;;  %v385_v39 = vpop.f32.mrf.mxu0  ;;  %v435_v55 = vadd.f32 %v434_v36, %v2698_v35 }
  0xd6   : > { %v411_v40 = vpop.f32.mrf.mxu1  ;;  %v386_v43 = vadd.f32 %v385_v39, %v2694_v29  ;;  %v461_v56 = vadd.f32 %v460_v37, %v2698_v35 }
  0xd7   : > { %v412_v44 = vadd.f32 %v411_v40, %v2694_v29  ;;  %v823_v1 = vmax.f32 %v435_v55, 0.0  ;;  %v2772_v40 = vld [vmem:[%s3172_s3 + $0x18] sm:$0x1] }
  0xd8   : > { %v838_v46 = vmax.f32 %v386_v43, 0.0  ;;  %v824_v2 = vmax.f32 %v461_v56, 0.0 }
  0xd9   : > { %v839_v47 = vmax.f32 %v412_v44, 0.0 }
  0xda   : > { %2117 = vmatpush.msk.msra.mxu1 %vm896_vm1, %v838_v46 }
  0xdb   : > { %2122 = vmatpush.msk.msra.mxu2 %vm896_vm1, %v839_v47 }
  0xdc   : > { %v437_v52 = vpop.f32.mrf.mxu2  ;;  %962 = vmatpush.msra.mxu1 %v821_v49 }
  0xdd   : > { %v463_v53 = vpop.f32.mrf.mxu3  ;;  %991 = vmatpush.msra.mxu2 %v822_v50  ;;  %v438_v57 = vadd.f32 %v437_v52, %v2694_v29  ;;  %v483_v59 = vpop.f32.mrf.mxu0 }
  0xde   : > { %v464_v58 = vadd.f32 %v463_v53, %v2694_v29  ;;  %v509_v60 = vpop.f32.mrf.mxu1  ;;  %963 = vmatpush.msra.mxu1 %v804_v51  ;;  %v484_v21 = vadd.f32 %v483_v59, %v2696_v34 }
  0xdf   : > { %992 = vmatpush.msra.mxu2 %v805_v48  ;;  %v840_v63 = vmax.f32 %v438_v57, 0.0  ;;  %2118 = vmatmul.msk.f32.vlgmr.msra.gmra.mxu1 %vm883_vm2, %v2711_v54  ;;  %v510_v22 = vadd.f32 %v509_v60, %v2696_v34 }
  0xe0   : > { %v841_v0 = vmax.f32 %v464_v58, 0.0  ;;  %2123 = vmatmul.msk.f32.vlgmr.msra.gmra.mxu2 %vm883_vm2, %v2711_v54  ;;  %v808_v27 = vmax.f32 %v484_v21, 0.0 }
  0xe1   : > { %2127 = vmatpush.msk.msra.mxu3 %vm896_vm1, %v840_v63  ;;  %v809_v28 = vmax.f32 %v510_v22, 0.0 }
  0xe2   : > { %2132 = vmatpush.msk.msrb.mxu0 %vm896_vm1, %v841_v0 }
  0xe3   : > { %1020 = vmatpush.msra.mxu3 %v823_v1 }
  0xe4   : > { %1049 = vmatpush.msrb.mxu0 %v824_v2  ;;  %v535_v6 = vpop.f32.mrf.mxu2 }
  0xe5   : > { %v561_v7 = vpop.f32.mrf.mxu3  ;;  %1021 = vmatpush.msra.mxu3 %v806_v4  ;;  %v486_v9 = vpop.f32.mrf.mxu0  ;;  %v536_v41 = vadd.f32 %v535_v6, %v2696_v34 }
  0xe6   : > { %1050 = vmatpush.msrb.mxu0 %v807_v5  ;;  %v512_v10 = vpop.f32.mrf.mxu1  ;;  %2128 = vmatmul.msk.f32.vlgmr.msra.gmra.mxu3 %vm883_vm2, %v2711_v54  ;;  %v487_v15 = vadd.f32 %v486_v9, %v2698_v35  ;;  %v562_v42 = vadd.f32 %v561_v7, %v2696_v34 }
  0xe7   : > { %2133 = vmatmul.msk.f32.vlgmr.msrb.gmra.mxu0 %vm883_vm2, %v2711_v54  ;;  %2119 = vmatmul.msk.f32.gmra.mxu1 %vm883_vm2, %v2731_v8  ;;  %v513_v18 = vadd.f32 %v512_v10, %v2698_v35  ;;  %v810_v47 = vmax.f32 %v536_v41, 0.0 }
  0xe8   : > { %2124 = vmatmul.msk.f32.gmra.mxu2 %vm883_vm2, %v2731_v8  ;;  %v825_v25 = vmax.f32 %v487_v15, 0.0  ;;  %v811_v48 = vmax.f32 %v562_v42, 0.0 }
  0xe9   : > { %v826_v26 = vmax.f32 %v513_v18, 0.0 }
  0xec   : > { %v538_v12 = vpop.f32.mrf.mxu2 }
  0xed   : > { %v564_v13 = vpop.f32.mrf.mxu3  ;;  %v489_v16 = vpop.f32.mrf.mxu0  ;;  %v539_v32 = vadd.f32 %v538_v12, %v2698_v35 }
  0xee   : > { %v515_v17 = vpop.f32.mrf.mxu1  ;;  %v490_v19 = vadd.f32 %v489_v16, %v2694_v29  ;;  %2129 = vmatmul.msk.f32.gmra.mxu3 %vm883_vm2, %v2731_v8  ;;  %v565_v33 = vadd.f32 %v564_v13, %v2698_v35 }
  0xef   : > { %v516_v20 = vadd.f32 %v515_v17, %v2694_v29  ;;  %2134 = vmatmul.msk.f32.gmra.mxu0 %vm883_vm2, %v2731_v8  ;;  %2120 = vmatmul.msk.f32.gmra.mxu1 %vm883_vm2, %v2747_v14  ;;  %v827_v45 = vmax.f32 %v539_v32, 0.0 }
  0xf0   : > { %2125 = vmatmul.msk.f32.gmra.mxu2 %vm883_vm2, %v2747_v14  ;;  %v842_v23 = vmax.f32 %v490_v19, 0.0  ;;  %v828_v46 = vmax.f32 %v565_v33, 0.0 }
  0xf1   : > { %v843_v24 = vmax.f32 %v516_v20, 0.0 }
  0xf2   : > { %2137 = vmatpush.msk.msrb.mxu1 %vm896_vm1, %v842_v23 }
  0xf3   : > { %2142 = vmatpush.msk.msrb.mxu2 %vm896_vm1, %v843_v24 }
  0xf4   : > { %v541_v30 = vpop.f32.mrf.mxu2  ;;  %1078 = vmatpush.msrb.mxu1 %v825_v25 }
  0xf5   : > { %v567_v31 = vpop.f32.mrf.mxu3  ;;  %1107 = vmatpush.msrb.mxu2 %v826_v26  ;;  %v542_v36 = vadd.f32 %v541_v30, %v2694_v29  ;;  %v587_v38 = vpop.f32.mrf.mxu0 }
  0xf6   : > { %v568_v37 = vadd.f32 %v567_v31, %v2694_v29  ;;  %v613_v39 = vpop.f32.mrf.mxu1  ;;  %2130 = vmatmul.msk.f32.gmra.mxu3 %vm883_vm2, %v2747_v14  ;;  %1079 = vmatpush.msrb.mxu1 %v808_v27  ;;  %v588_v62 = vadd.f32 %v587_v38, %v2696_v34 }
  0xf7   : > { %2135 = vmatmul.msk.f32.gmra.mxu0 %vm883_vm2, %v2747_v14  ;;  %v844_v43 = vmax.f32 %v542_v36, 0.0  ;;  %1108 = vmatpush.msrb.mxu2 %v809_v28  ;;  %v614_v63 = vadd.f32 %v613_v39, %v2696_v34 }
  0xf8   : > { %v845_v44 = vmax.f32 %v568_v37, 0.0  ;;  %2121 = vmatmul.msk.f32.gmra.mxu1 %vm883_vm2, %v2772_v40  ;;  %2126 = vmatmul.msk.f32.gmra.mxu2 %vm883_vm2, %v2772_v40  ;;  %v812_v4 = vmax.f32 %v588_v62, 0.0 }
  0xf9   : > { %2147 = vmatpush.msk.msrb.mxu3 %vm896_vm1, %v844_v43  ;;  %v813_v5 = vmax.f32 %v614_v63, 0.0 }
  0xfa   : > { %2152 = vmatpush.msk.msra.mxu0 %vm896_vm1, %v845_v44 }
  0xfb   : > { %1136 = vmatpush.msrb.mxu3 %v827_v45 }
  0xfc   : > { %1165 = vmatpush.msra.mxu0 %v828_v46  ;;  %v639_v49 = vpop.f32.mrf.mxu2 }
  0xfd   : > { %v665_v50 = vpop.f32.mrf.mxu3  ;;  %1137 = vmatpush.msrb.mxu3 %v810_v47  ;;  %v590_v51 = vpop.f32.mrf.mxu0  ;;  %v640_v16 = vadd.f32 %v639_v49, %v2696_v34 }
  0xfe   : > { %1166 = vmatpush.msra.mxu0 %v811_v48  ;;  %v616_v52 = vpop.f32.mrf.mxu1  ;;  %2131 = vmatmul.msk.f32.gmra.mxu3 %vm883_vm2, %v2772_v40  ;;  %v591_v56 = vadd.f32 %v590_v51, %v2698_v35  ;;  %v666_v17 = vadd.f32 %v665_v50, %v2696_v34 }
  0xff   : > { %2136 = vmatmul.msk.f32.gmra.mxu0 %vm883_vm2, %v2772_v40  ;;  %v617_v59 = vadd.f32 %v616_v52, %v2698_v35  ;;  %v814_v22 = vmax.f32 %v640_v16, 0.0 }
 0x100   : > { %2138 = vmatmul.msk.f32.vlgmr.msrb.gmra.mxu1 %vm883_vm2, %v2711_v54  ;;  %2143 = vmatmul.msk.f32.vlgmr.msrb.gmra.mxu2 %vm883_vm2, %v2711_v54  ;;  %v829_v2 = vmax.f32 %v591_v56, 0.0  ;;  %v815_v23 = vmax.f32 %v666_v17, 0.0 }
 0x101   : > { %v830_v3 = vmax.f32 %v617_v59, 0.0 }
 0x104   : > { %v642_v53 = vpop.f32.mrf.mxu2 }
 0x105   : > { %v668_v55 = vpop.f32.mrf.mxu3  ;;  %v593_v57 = vpop.f32.mrf.mxu0  ;;  %v643_v9 = vadd.f32 %v642_v53, %v2698_v35 }
 0x106   : > { %v619_v58 = vpop.f32.mrf.mxu1  ;;  %v594_v60 = vadd.f32 %v593_v57, %v2694_v29  ;;  %2148 = vmatmul.msk.f32.vlgmr.msrb.gmra.mxu3 %vm883_vm2, %v2711_v54  ;;  %v669_v10 = vadd.f32 %v668_v55, %v2698_v35 }
 0x107   : > { %v620_v61 = vadd.f32 %v619_v58, %v2694_v29  ;;  %2153 = vmatmul.msk.f32.vlgmr.msra.gmra.mxu0 %vm883_vm2, %v2711_v54  ;;  %v831_v20 = vmax.f32 %v643_v9, 0.0 }
 0x108   : > { %v846_v0 = vmax.f32 %v594_v60, 0.0  ;;  %2139 = vmatmul.msk.f32.gmra.mxu1 %vm883_vm2, %v2731_v8  ;;  %2144 = vmatmul.msk.f32.gmra.mxu2 %vm883_vm2, %v2731_v8  ;;  %v832_v21 = vmax.f32 %v669_v10, 0.0 }
 0x109   : > { %v847_v1 = vmax.f32 %v620_v61, 0.0 }
 0x10a   : > { %2157 = vmatpush.msk.msra.mxu1 %vm896_vm1, %v846_v0 }
 0x10b   : > { %2162 = vmatpush.msk.msra.mxu2 %vm896_vm1, %v847_v1 }
 0x10c   : > { %v645_v6 = vpop.f32.mrf.mxu2  ;;  %1194 = vmatpush.msra.mxu1 %v829_v2 }
 0x10d   : > { %v671_v7 = vpop.f32.mrf.mxu3  ;;  %1223 = vmatpush.msra.mxu2 %v830_v3  ;;  %v646_v11 = vadd.f32 %v645_v6, %v2694_v29  ;;  %v691_v13 = vpop.f32.mrf.mxu0 }
 0x10e   : > { %v672_v12 = vadd.f32 %v671_v7, %v2694_v29  ;;  %v717_v15 = vpop.f32.mrf.mxu1  ;;  %2149 = vmatmul.msk.f32.gmra.mxu3 %vm883_vm2, %v2731_v8  ;;  %1195 = vmatpush.msra.mxu1 %v812_v4  ;;  %v692_v39 = vadd.f32 %v691_v13, %v2696_v34  ;;  %v2928_v13 = vpop.permute.xlu2 %875 }
 0x10f   : > { %2154 = vmatmul.msk.f32.gmra.mxu0 %vm883_vm2, %v2731_v8  ;;  %v848_v18 = vmax.f32 %v646_v11, 0.0  ;;  %1224 = vmatpush.msra.mxu2 %v813_v5  ;;  %v718_v41 = vadd.f32 %v717_v15, %v2696_v34 }
 0x110   : > { %v849_v19 = vmax.f32 %v672_v12, 0.0  ;;  %2140 = vmatmul.msk.f32.gmra.mxu1 %vm883_vm2, %v2747_v14  ;;  %2145 = vmatmul.msk.f32.gmra.mxu2 %vm883_vm2, %v2747_v14  ;;  %v816_v46 = vmax.f32 %v692_v39, 0.0  ;;  %v2951_v39 = vld [vmem:[%s3174_s5] sm:$0x3] }
 0x111   : > { %2167 = vmatpush.msk.msra.mxu3 %vm896_vm1, %v848_v18  ;;  %v817_v47 = vmax.f32 %v718_v41, 0.0 }
 0x112   : > { %2172 = vmatpush.msk.msrb.mxu0 %vm896_vm1, %v849_v19 }
 0x113   : > { %1252 = vmatpush.msra.mxu3 %v831_v20 }
 0x114   : > { %1281 = vmatpush.msrb.mxu0 %v832_v21  ;;  %v743_v24 = vpop.f32.mrf.mxu2 }
 0x115   : > { %v769_v25 = vpop.f32.mrf.mxu3  ;;  %1253 = vmatpush.msra.mxu3 %v814_v22  ;;  %v694_v26 = vpop.f32.mrf.mxu0  ;;  %v744_v56 = vadd.f32 %v743_v24, %v2696_v34 }
 0x116   : > { %1282 = vmatpush.msrb.mxu0 %v815_v23  ;;  %v720_v27 = vpop.f32.mrf.mxu1  ;;  %2150 = vmatmul.msk.f32.gmra.mxu3 %vm883_vm2, %v2747_v14  ;;  %v695_v31 = vadd.f32 %v694_v26, %v2698_v35  ;;  %v770_v57 = vadd.f32 %v769_v25, %v2696_v34  ;;  %v2934_v20 = vpop.permute.xlu2 %870 }
 0x117   : > { %2155 = vmatmul.msk.f32.gmra.mxu0 %vm883_vm2, %v2747_v14  ;;  %v721_v36 = vadd.f32 %v720_v27, %v2698_v35  ;;  %v818_v62 = vmax.f32 %v744_v56, 0.0 }
 0x118   : > { %2141 = vmatmul.msk.f32.gmra.mxu1 %vm883_vm2, %v2772_v40  ;;  %2146 = vmatmul.msk.f32.gmra.mxu2 %vm883_vm2, %v2772_v40  ;;  %v833_v44 = vmax.f32 %v695_v31, 0.0  ;;  %v819_v63 = vmax.f32 %v770_v57, 0.0 }
 0x119   : > { %v834_v45 = vmax.f32 %v721_v36, 0.0 }
 0x11c   : > { %v746_v28 = vpop.f32.mrf.mxu2 }
 0x11d   : > { %v772_v30 = vpop.f32.mrf.mxu3  ;;  %v697_v32 = vpop.f32.mrf.mxu0  ;;  %v747_v50 = vadd.f32 %v746_v28, %v2698_v35 }
 0x11e   : > { %v723_v33 = vpop.f32.mrf.mxu1  ;;  %v698_v37 = vadd.f32 %v697_v32, %v2694_v29  ;;  %2151 = vmatmul.msk.f32.gmra.mxu3 %vm883_vm2, %v2772_v40  ;;  %v773_v51 = vadd.f32 %v772_v30, %v2698_v35 }
 0x11f   : > { %v724_v38 = vadd.f32 %v723_v33, %v2694_v29  ;;  %2156 = vmatmul.msk.f32.gmra.mxu0 %vm883_vm2, %v2772_v40  ;;  %v835_v60 = vmax.f32 %v747_v50, 0.0 }
 0x120   : > { %v850_v42 = vmax.f32 %v698_v37, 0.0  ;;  %2158 = vmatmul.msk.f32.vlgmr.msra.gmra.mxu1 %vm883_vm2, %v2711_v54  ;;  %2163 = vmatmul.msk.f32.vlgmr.msra.gmra.mxu2 %vm883_vm2, %v2711_v54  ;;  %v836_v61 = vmax.f32 %v773_v51, 0.0 }
 0x121   : > { %v851_v43 = vmax.f32 %v724_v38, 0.0 }
 0x122   : > { %2177 = vmatpush.msk.msrb.mxu1 %vm896_vm1, %v850_v42 }
 0x123   : > { %2182 = vmatpush.msk.msrb.mxu2 %vm896_vm1, %v851_v43 }
 0x124   : > { %v749_v48 = vpop.f32.mrf.mxu2  ;;  %1310 = vmatpush.msrb.mxu1 %v833_v44 }
 0x125   : > { %v775_v49 = vpop.f32.mrf.mxu3  ;;  %1339 = vmatpush.msrb.mxu2 %v834_v45  ;;  %v750_v52 = vadd.f32 %v749_v48, %v2694_v29  ;;  %v795_v55 = vpop.f32.mrf.mxu0 }
 0x126   : > { %v776_v53 = vadd.f32 %v775_v49, %v2694_v29  ;;  %2168 = vmatmul.msk.f32.vlgmr.msra.gmra.mxu3 %vm883_vm2, %v2711_v54  ;;  %1311 = vmatpush.msrb.mxu1 %v816_v46  ;;  %v796_v5 = vadd.f32 %v795_v55, %v2696_v34 }
 0x127   : > { %2173 = vmatmul.msk.f32.vlgmr.msrb.gmra.mxu0 %vm883_vm2, %v2711_v54  ;;  %v852_v58 = vmax.f32 %v750_v52, 0.0  ;;  %1340 = vmatpush.msrb.mxu2 %v817_v47 }
 0x128   : > { %v853_v59 = vmax.f32 %v776_v53, 0.0  ;;  %2159 = vmatmul.msk.f32.gmra.mxu1 %vm883_vm2, %v2731_v8  ;;  %2164 = vmatmul.msk.f32.gmra.mxu2 %vm883_vm2, %v2731_v8 }
 0x129   : > { %2187 = vmatpush.msk.msrb.mxu3 %vm896_vm1, %v852_v58 }
 0x12a   : > { %2192 = vmatpush.msk.msra.mxu0 %vm896_vm1, %v853_v59 }
 0x12b   : > { %1368 = vmatpush.msrb.mxu3 %v835_v60 }
 0x12c   : > { %1397 = vmatpush.msra.mxu0 %v836_v61 }
 0x12d   : > { %1369 = vmatpush.msrb.mxu3 %v818_v62  ;;  %v798_v0 = vpop.f32.mrf.mxu0 }
 0x12e   : > { %1398 = vmatpush.msra.mxu0 %v819_v63  ;;  %2169 = vmatmul.msk.f32.gmra.mxu3 %vm883_vm2, %v2731_v8  ;;  %v799_v2 = vadd.f32 %v798_v0, %v2698_v35 }
 0x12f   : > { %2174 = vmatmul.msk.f32.gmra.mxu0 %vm883_vm2, %v2731_v8 }
 0x130   : > { %2160 = vmatmul.msk.f32.gmra.mxu1 %vm883_vm2, %v2747_v14  ;;  %2165 = vmatmul.msk.f32.gmra.mxu2 %vm883_vm2, %v2747_v14  ;;  %v837_v6 = vmax.f32 %v799_v2, 0.0 }
 0x135   : > { %v801_v1 = vpop.f32.mrf.mxu0 }
 0x136   : > { %v802_v3 = vadd.f32 %v801_v1, %v2694_v29  ;;  %2170 = vmatmul.msk.f32.gmra.mxu3 %vm883_vm2, %v2747_v14  ;;  %v820_v29 = vmax.f32 %v796_v5, 0.0 }
 0x137   : > { %2175 = vmatmul.msk.f32.gmra.mxu0 %vm883_vm2, %v2747_v14 }
 0x138   : > { %v854_v4 = vmax.f32 %v802_v3, 0.0  ;;  %2161 = vmatmul.msk.f32.gmra.mxu1 %vm883_vm2, %v2772_v40  ;;  %2166 = vmatmul.msk.f32.gmra.mxu2 %vm883_vm2, %v2772_v40 }
 0x13a   : > { %2197 = vmatpush.msk.msra.mxu1 %vm896_vm1, %v854_v4 }
 0x13c   : > { %1426 = vmatpush.msra.mxu1 %v837_v6 }
 0x13e   : > { %2171 = vmatmul.msk.f32.gmra.mxu3 %vm883_vm2, %v2772_v40  ;;  %1427 = vmatpush.msra.mxu1 %v820_v29 }
 0x13f   : > { %2176 = vmatmul.msk.f32.gmra.mxu0 %vm883_vm2, %v2772_v40 }
 0x140   : > { %2178 = vmatmul.msk.f32.vlgmr.msrb.gmra.mxu1 %vm883_vm2, %v2711_v54  ;;  %2183 = vmatmul.msk.f32.vlgmr.msrb.gmra.mxu2 %vm883_vm2, %v2711_v54 }
 0x146   : > { %2188 = vmatmul.msk.f32.vlgmr.msrb.gmra.mxu3 %vm883_vm2, %v2711_v54 }
 0x147   : > { %2193 = vmatmul.msk.f32.vlgmr.msra.gmra.mxu0 %vm883_vm2, %v2711_v54 }
 0x148   : > { %2179 = vmatmul.msk.f32.gmra.mxu1 %vm883_vm2, %v2731_v8  ;;  %2184 = vmatmul.msk.f32.gmra.mxu2 %vm883_vm2, %v2731_v8 }
 0x14e   : > { %2189 = vmatmul.msk.f32.gmra.mxu3 %vm883_vm2, %v2731_v8 }
 0x14f   : > { %2194 = vmatmul.msk.f32.gmra.mxu0 %vm883_vm2, %v2731_v8 }
 0x150   : > { %2180 = vmatmul.msk.f32.gmra.mxu1 %vm883_vm2, %v2747_v14  ;;  %2185 = vmatmul.msk.f32.gmra.mxu2 %vm883_vm2, %v2747_v14 }
 0x156   : > { %2190 = vmatmul.msk.f32.gmra.mxu3 %vm883_vm2, %v2747_v14 }
 0x157   : > { %2195 = vmatmul.msk.f32.gmra.mxu0 %vm883_vm2, %v2747_v14 }
 0x158   : > { %2181 = vmatmul.msk.f32.gmra.mxu1 %vm883_vm2, %v2772_v40  ;;  %2186 = vmatmul.msk.f32.gmra.mxu2 %vm883_vm2, %v2772_v40 }
 0x15c   : > { %v965_v34 = vpop.f32.mrf.mxu1 }
 0x15e   : > { %2191 = vmatmul.msk.f32.gmra.mxu3 %vm883_vm2, %v2772_v40 }
 0x15f   : > { %2196 = vmatmul.msk.f32.gmra.mxu0 %vm883_vm2, %v2772_v40 }
 0x160   : > { %2198 = vmatmul.msk.f32.vlgmr.msra.gmra.mxu1 %vm883_vm2, %v2711_v54  ;;  %v2932_v54 = vpop.permute.xlu1 %880 }
 0x163   : > { %v994_v35 = vpop.f32.mrf.mxu2 }
 0x164   : > { %v2924_v7 = vpop.f32.mrf.mxu0  ;;  %v968_v9 = vpop.f32.mrf.mxu1 }
 0x165   : > { %v969_v23 = vadd.f32 %v968_v9, %v2934_v20 }
 0x167   : > { %v1458_v32 = vmax.f32 %v969_v23, 0.0 }
 0x168   : > { %2199 = vmatmul.msk.f32.gmra.mxu1 %vm883_vm2, %v2731_v8 }
 0x169   : > { %v1023_v10 = vpop.f32.mrf.mxu3 }
 0x16b   : > { %v997_v11 = vpop.f32.mrf.mxu2 }
 0x16c   : > { %v1055_v12 = vpop.f32.mrf.mxu0  ;;  %v971_v15 = vpop.f32.mrf.mxu1 }
 0x16d   : > { %v972_v8 = vadd.f32 %v971_v15, %v2928_v13  ;;  %v1056_v60 = vadd.f32 %v1055_v12, %v2934_v20 }
 0x16f   : > { %v1475_v27 = vmax.f32 %v972_v8, 0.0  ;;  %v1461_v0 = vmax.f32 %v1056_v60, 0.0 }
 0x170   : > { %2200 = vmatmul.msk.f32.gmra.mxu1 %vm883_vm2, %v2747_v14  ;;  %v2941_v14 = vpop.permute.xlu0 %865 }
 0x171   : > { %v1026_v16 = vpop.f32.mrf.mxu3  ;;  %v966_v25 = vadd.f32 %v965_v34, %v2941_v14  ;;  %v995_v41 = vadd.f32 %v994_v35, %v2941_v14  ;;  %v1024_v55 = vadd.f32 %v1023_v10, %v2941_v14  ;;  %v1053_v61 = vadd.f32 %v2924_v7, %v2941_v14 }
 0x172   : > { %v1027_v48 = vadd.f32 %v1026_v16, %v2934_v20 }
 0x173   : > { %v1000_v17 = vpop.f32.mrf.mxu2  ;;  %v1441_v36 = vmax.f32 %v966_v25, 0.0  ;;  %v1442_v51 = vmax.f32 %v995_v41, 0.0  ;;  %v1443_v63 = vmax.f32 %v1024_v55, 0.0  ;;  %v1444_v3 = vmax.f32 %v1053_v61, 0.0 }
 0x174   : > { %v1058_v18 = vpop.f32.mrf.mxu0  ;;  %v1001_v26 = vadd.f32 %v1000_v17, %v2928_v13  ;;  %v1460_v59 = vmax.f32 %v1027_v48, 0.0 }
 0x175   : > { %v974_v19 = vpop.f32.mrf.mxu1  ;;  %v1059_v45 = vadd.f32 %v1058_v18, %v2928_v13 }
 0x176   : > { %v975_v21 = vadd.f32 %v974_v19, %v2932_v54  ;;  %v1476_v37 = vmax.f32 %v1001_v26, 0.0 }
 0x177   : > { %v1478_v57 = vmax.f32 %v1059_v45, 0.0 }
 0x178   : > { %v1492_v22 = vmax.f32 %v975_v21, 0.0  ;;  %2201 = vmatmul.msk.f32.gmra.mxu1 %vm883_vm2, %v2772_v40  ;;  %v998_v40 = vadd.f32 %v997_v11, %v2934_v20 }
 0x179   : > { %v1029_v24 = vpop.f32.mrf.mxu3 }
 0x17a   : > { %2202 = vmatpush.msk.msra.mxu2 %vm1520_vm3, %v1492_v22  ;;  %v1030_v42 = vadd.f32 %v1029_v24, %v2928_v13  ;;  %v1459_v43 = vmax.f32 %v998_v40, 0.0 }
 0x17b   : > { %v1003_v28 = vpop.f32.mrf.mxu2 }
 0x17c   : > { %v1061_v30 = vpop.f32.mrf.mxu0  ;;  %v1004_v31 = vadd.f32 %v1003_v28, %v2932_v54  ;;  %1585 = vmatpush.msra.mxu2 %v1475_v27  ;;  %v1477_v52 = vmax.f32 %v1030_v42, 0.0 }
 0x17d   : > { %v1081_v33 = vpop.f32.mrf.mxu1  ;;  %v1062_v46 = vadd.f32 %v1061_v30, %v2932_v54 }
 0x17e   : > { %v1493_v38 = vmax.f32 %v1004_v31, 0.0  ;;  %1586 = vmatpush.msra.mxu2 %v1458_v32  ;;  %v1082_v11 = vadd.f32 %v1081_v33, %v2941_v14 }
 0x17f   : > { %v1495_v58 = vmax.f32 %v1062_v46, 0.0 }
 0x180   : > { %1587 = vmatpush.msra.mxu2 %v1441_v36  ;;  %2204 = vmatpush.msk.msra.mxu3 %vm1520_vm3, %v1493_v38  ;;  %v1445_v24 = vmax.f32 %v1082_v11, 0.0 }
 0x181   : > { %v1032_v44 = vpop.f32.mrf.mxu3  ;;  %2203 = vmatmul.msk.f32.vlgmr.msra.gmra.mxu2 %vm1516_vm4, %v2951_v39 }
 0x182   : > { %v1033_v47 = vadd.f32 %v1032_v44, %v2932_v54  ;;  %1605 = vmatpush.msra.mxu3 %v1476_v37 }
 0x183   : > { %v1110_v49 = vpop.f32.mrf.mxu2 }
 0x184   : > { %v2962_v50 = vpop.f32.mrf.mxu0  ;;  %v1494_v53 = vmax.f32 %v1033_v47, 0.0  ;;  %1606 = vmatpush.msra.mxu3 %v1459_v43  ;;  %v1111_v31 = vadd.f32 %v1110_v49, %v2941_v14 }
 0x185   : > { %v1084_v56 = vpop.f32.mrf.mxu1  ;;  %v1169_v37 = vadd.f32 %v2962_v50, %v2941_v14 }
 0x186   : > { %1607 = vmatpush.msra.mxu3 %v1442_v51  ;;  %2206 = vmatpush.msk.msrb.mxu2 %vm1520_vm3, %v1494_v53  ;;  %v1085_v9 = vadd.f32 %v1084_v56, %v2934_v20  ;;  %v1446_v45 = vmax.f32 %v1111_v31, 0.0 }
 0x187   : > { %2205 = vmatmul.msk.f32.vlgmr.msra.gmra.mxu3 %vm1516_vm4, %v2951_v39  ;;  %v1448_v49 = vmax.f32 %v1169_v37, 0.0 }
 0x188   : > { %2208 = vmatpush.msk.msrb.mxu3 %vm1520_vm3, %v1495_v58  ;;  %1625 = vmatpush.msrb.mxu2 %v1477_v52  ;;  %v1462_v17 = vmax.f32 %v1085_v9, 0.0 }
 0x189   : > { %v2972_v62 = vpop.f32.mrf.mxu3 }
 0x18a   : > { %1645 = vmatpush.msrb.mxu3 %v1478_v57  ;;  %1626 = vmatpush.msrb.mxu2 %v1460_v59  ;;  %v1140_v50 = vadd.f32 %v2972_v62, %v2941_v14 }
 0x18b   : > { %v1113_v1 = vpop.f32.mrf.mxu2 }
 0x18c   : > { %v1171_v2 = vpop.f32.mrf.mxu0  ;;  %1646 = vmatpush.msrb.mxu3 %v1461_v0  ;;  %1627 = vmatpush.msrb.mxu2 %v1443_v63  ;;  %v1114_v21 = vadd.f32 %v1113_v1, %v2934_v20  ;;  %v1447_v53 = vmax.f32 %v1140_v50, 0.0 }
 0x18d   : > { %v1087_v4 = vpop.f32.mrf.mxu1  ;;  %2207 = vmatmul.msk.f32.vlgmr.msrb.gmra.mxu2 %vm1516_vm4, %v2951_v39  ;;  %v1172_v26 = vadd.f32 %v1171_v2, %v2934_v20 }
 0x18e   : > { %1647 = vmatpush.msrb.mxu3 %v1444_v3  ;;  %v1088_v35 = vadd.f32 %v1087_v4, %v2928_v13  ;;  %v1463_v32 = vmax.f32 %v1114_v21, 0.0 }
 0x18f   : > { %2209 = vmatmul.msk.f32.vlgmr.msrb.gmra.mxu3 %vm1516_vm4, %v2951_v39  ;;  %v1465_v38 = vmax.f32 %v1172_v26, 0.0 }
 0x190   : > { %v1479_v15 = vmax.f32 %v1088_v35, 0.0 }
 0x191   : > { %v1142_v5 = vpop.f32.mrf.mxu3 }
 0x192   : > { %v1143_v42 = vadd.f32 %v1142_v5, %v2934_v20 }
 0x193   : > { %v1116_v6 = vpop.f32.mrf.mxu2 }
 0x194   : > { %v1174_v29 = vpop.f32.mrf.mxu0  ;;  %v1117_v16 = vadd.f32 %v1116_v6, %v2928_v13  ;;  %v1464_v51 = vmax.f32 %v1143_v42, 0.0 }
 0x195   : > { %v1090_v34 = vpop.f32.mrf.mxu1  ;;  %v1175_v8 = vadd.f32 %v1174_v29, %v2928_v13 }
 0x196   : > { %v1091_v7 = vadd.f32 %v1090_v34, %v2932_v54  ;;  %v1480_v27 = vmax.f32 %v1117_v16, 0.0 }
 0x197   : > { %v1482_v40 = vmax.f32 %v1175_v8, 0.0 }
 0x198   : > { %v1496_v10 = vmax.f32 %v1091_v7, 0.0 }
 0x199   : > { %v1145_v12 = vpop.f32.mrf.mxu3 }
 0x19a   : > { %2210 = vmatpush.msk.msra.mxu2 %vm1520_vm3, %v1496_v10  ;;  %v1146_v33 = vadd.f32 %v1145_v12, %v2928_v13 }
 0x19b   : > { %v1119_v18 = vpop.f32.mrf.mxu2 }
 0x19c   : > { %v1177_v19 = vpop.f32.mrf.mxu0  ;;  %v1120_v22 = vadd.f32 %v1119_v18, %v2932_v54  ;;  %1665 = vmatpush.msra.mxu2 %v1479_v15  ;;  %v1481_v47 = vmax.f32 %v1146_v33, 0.0 }
 0x19d   : > { %v1178_v23 = vadd.f32 %v1177_v19, %v2932_v54  ;;  %v1197_v25 = vpop.f32.mrf.mxu1 }
 0x19e   : > { %v1497_v28 = vmax.f32 %v1120_v22, 0.0  ;;  %1666 = vmatpush.msra.mxu2 %v1462_v17  ;;  %v1198_v3 = vadd.f32 %v1197_v25, %v2941_v14 }
 0x19f   : > { %v1499_v30 = vmax.f32 %v1178_v23, 0.0 }
 0x1a0   : > { %1667 = vmatpush.msra.mxu2 %v1445_v24  ;;  %2212 = vmatpush.msk.msra.mxu3 %vm1520_vm3, %v1497_v28  ;;  %v1449_v15 = vmax.f32 %v1198_v3, 0.0 }
 0x1a1   : > { %v1148_v36 = vpop.f32.mrf.mxu3  ;;  %2211 = vmatmul.msk.f32.vlgmr.msra.gmra.mxu2 %vm1516_vm4, %v2951_v39 }
 0x1a2   : > { %v1149_v41 = vadd.f32 %v1148_v36, %v2932_v54  ;;  %2216 = vmatpush.msk.msrb.mxu2 %vm1520_vm3, %v1499_v30  ;;  %1685 = vmatpush.msra.mxu3 %v1480_v27 }
 0x1a3   : > { %v1226_v43 = vpop.f32.mrf.mxu2 }
 0x1a4   : > { %v1284_v44 = vpop.f32.mrf.mxu0  ;;  %v1498_v46 = vmax.f32 %v1149_v41, 0.0  ;;  %1725 = vmatpush.msrb.mxu2 %v1482_v40  ;;  %1686 = vmatpush.msra.mxu3 %v1463_v32  ;;  %v1227_v21 = vadd.f32 %v1226_v43, %v2941_v14 }
 0x1a5   : > { %v1200_v48 = vpop.f32.mrf.mxu1  ;;  %v1285_v23 = vadd.f32 %v1284_v44, %v2941_v14 }
 0x1a6   : > { %1726 = vmatpush.msrb.mxu2 %v1465_v38  ;;  %1687 = vmatpush.msra.mxu3 %v1446_v45  ;;  %v1201_v0 = vadd.f32 %v1200_v48, %v2934_v20  ;;  %v1450_v31 = vmax.f32 %v1227_v21, 0.0 }
 0x1a7   : > { %2214 = vmatpush.msk.msrb.mxu0 %vm1520_vm3, %v1498_v46  ;;  %2213 = vmatmul.msk.f32.vlgmr.msra.gmra.mxu3 %vm1516_vm4, %v2951_v39  ;;  %v1452_v33 = vmax.f32 %v1285_v23, 0.0 }
 0x1a8   : > { %1727 = vmatpush.msrb.mxu2 %v1448_v49  ;;  %v1466_v35 = vmax.f32 %v1201_v0, 0.0 }
 0x1a9   : > { %1705 = vmatpush.msrb.mxu0 %v1481_v47  ;;  %v1255_v52 = vpop.f32.mrf.mxu3  ;;  %2217 = vmatmul.msk.f32.vlgmr.msrb.gmra.mxu2 %vm1516_vm4, %v2951_v39 }
 0x1aa   : > { %v1256_v37 = vadd.f32 %v1255_v52, %v2941_v14 }
 0x1ab   : > { %1706 = vmatpush.msrb.mxu0 %v1464_v51  ;;  %v1229_v55 = vpop.f32.mrf.mxu2 }
 0x1ac   : > { %v1287_v56 = vpop.f32.mrf.mxu0  ;;  %v1230_v7 = vadd.f32 %v1229_v55, %v2934_v20  ;;  %v1451_v42 = vmax.f32 %v1256_v37, 0.0 }
 0x1ad   : > { %1707 = vmatpush.msrb.mxu0 %v1447_v53  ;;  %v1203_v57 = vpop.f32.mrf.mxu1  ;;  %v1288_v11 = vadd.f32 %v1287_v56, %v2934_v20 }
 0x1ae   : > { %2215 = vmatmul.msk.f32.vlgmr.msrb.gmra.mxu0 %vm1516_vm4, %v2951_v39  ;;  %v1204_v62 = vadd.f32 %v1203_v57, %v2928_v13  ;;  %v1467_v8 = vmax.f32 %v1230_v7, 0.0 }
 0x1af   : > { %v1469_v24 = vmax.f32 %v1288_v11, 0.0 }
 0x1b0   : > { %v1483_v4 = vmax.f32 %v1204_v62, 0.0 }
 0x1b1   : > { %v1258_v58 = vpop.f32.mrf.mxu3 }
 0x1b2   : > { %v1259_v26 = vadd.f32 %v1258_v58, %v2934_v20 }
 0x1b3   : > { %v1232_v59 = vpop.f32.mrf.mxu2 }
 0x1b4   : > { %v1290_v60 = vpop.f32.mrf.mxu0  ;;  %v1233_v5 = vadd.f32 %v1232_v59, %v2928_v13  ;;  %v1468_v38 = vmax.f32 %v1259_v26, 0.0 }
 0x1b5   : > { %v1206_v61 = vpop.f32.mrf.mxu1  ;;  %v1291_v6 = vadd.f32 %v1290_v60, %v2928_v13 }
 0x1b6   : > { %v1207_v63 = vadd.f32 %v1206_v61, %v2932_v54  ;;  %v1484_v16 = vmax.f32 %v1233_v5, 0.0 }
 0x1b7   : > { %v1486_v19 = vmax.f32 %v1291_v6, 0.0 }
 0x1b8   : > { %v1500_v1 = vmax.f32 %v1207_v63, 0.0 }
 0x1b9   : > { %v1261_v2 = vpop.f32.mrf.mxu3 }
 0x1ba   : > { %2218 = vmatpush.msk.msrb.mxu3 %vm1520_vm3, %v1500_v1  ;;  %v1262_v22 = vadd.f32 %v1261_v2, %v2928_v13 }
 0x1bb   : > { %v1235_v29 = vpop.f32.mrf.mxu2 }
 0x1bc   : > { %v1293_v34 = vpop.f32.mrf.mxu0  ;;  %v1236_v9 = vadd.f32 %v1235_v29, %v2932_v54  ;;  %1745 = vmatpush.msrb.mxu3 %v1483_v4  ;;  %v1485_v32 = vmax.f32 %v1262_v22, 0.0 }
 0x1bd   : > { %v1294_v10 = vadd.f32 %v1293_v34, %v2932_v54  ;;  %v1313_v12 = vpop.f32.mrf.mxu1 }
 0x1be   : > { %v1501_v17 = vmax.f32 %v1236_v9, 0.0  ;;  %1746 = vmatpush.msrb.mxu3 %v1466_v35  ;;  %v1314_v56 = vadd.f32 %v1313_v12, %v2941_v14 }
 0x1bf   : > { %v1503_v18 = vmax.f32 %v1294_v10, 0.0 }
 0x1c0   : > { %1747 = vmatpush.msrb.mxu3 %v1449_v15  ;;  %2220 = vmatpush.msk.msra.mxu0 %vm1520_vm3, %v1501_v17  ;;  %v1453_v2 = vmax.f32 %v1314_v56, 0.0 }
 0x1c1   : > { %2224 = vmatpush.msk.msra.mxu2 %vm1520_vm3, %v1503_v18  ;;  %v1264_v25 = vpop.f32.mrf.mxu3  ;;  %2219 = vmatmul.msk.f32.vlgmr.msrb.gmra.mxu3 %vm1516_vm4, %v2951_v39 }
 0x1c2   : > { %v1265_v27 = vadd.f32 %v1264_v25, %v2932_v54  ;;  %1765 = vmatpush.msra.mxu0 %v1484_v16 }
 0x1c3   : > { %1805 = vmatpush.msra.mxu2 %v1486_v19  ;;  %v1342_v28 = vpop.f32.mrf.mxu2 }
 0x1c4   : > { %v1400_v30 = vpop.f32.mrf.mxu0  ;;  %v1502_v40 = vmax.f32 %v1265_v27, 0.0  ;;  %1766 = vmatpush.msra.mxu0 %v1467_v8  ;;  %v1343_v29 = vadd.f32 %v1342_v28, %v2941_v14 }
 0x1c5   : > { %1806 = vmatpush.msra.mxu2 %v1469_v24  ;;  %v1316_v36 = vpop.f32.mrf.mxu1  ;;  %v1401_v35 = vadd.f32 %v1400_v30, %v2941_v14 }
 0x1c6   : > { %1767 = vmatpush.msra.mxu0 %v1450_v31  ;;  %2222 = vmatpush.msk.msrb.mxu1 %vm1520_vm3, %v1502_v40  ;;  %v1317_v52 = vadd.f32 %v1316_v36, %v2934_v20  ;;  %v1454_v16 = vmax.f32 %v1343_v29, 0.0 }
 0x1c7   : > { %1807 = vmatpush.msra.mxu2 %v1452_v33  ;;  %2221 = vmatmul.msk.f32.vlgmr.msra.gmra.mxu0 %vm1516_vm4, %v2951_v39  ;;  %v1456_v19 = vmax.f32 %v1401_v35, 0.0 }
 0x1c8   : > { %2225 = vmatmul.msk.f32.vlgmr.msra.gmra.mxu2 %vm1516_vm4, %v2951_v39  ;;  %1785 = vmatpush.msrb.mxu1 %v1485_v32  ;;  %v1470_v60 = vmax.f32 %v1317_v52, 0.0 }
 0x1c9   : > { %v1371_v41 = vpop.f32.mrf.mxu3 }
 0x1ca   : > { %1786 = vmatpush.msrb.mxu1 %v1468_v38  ;;  %v1372_v8 = vadd.f32 %v1371_v41, %v2941_v14 }
 0x1cb   : > { %v1345_v43 = vpop.f32.mrf.mxu2 }
 0x1cc   : > { %v1403_v44 = vpop.f32.mrf.mxu0  ;;  %1787 = vmatpush.msrb.mxu1 %v1451_v42  ;;  %v1346_v3 = vadd.f32 %v1345_v43, %v2934_v20  ;;  %v1455_v24 = vmax.f32 %v1372_v8, 0.0 }
 0x1cd   : > { %v1319_v45 = vpop.f32.mrf.mxu1  ;;  %2223 = vmatmul.msk.f32.vlgmr.msrb.gmra.mxu1 %vm1516_vm4, %v2951_v39  ;;  %v1404_v6 = vadd.f32 %v1403_v44, %v2934_v20 }
 0x1ce   : > { %v1320_v50 = vadd.f32 %v1319_v45, %v2928_v13  ;;  %v1471_v10 = vmax.f32 %v1346_v3, 0.0 }
 0x1cf   : > { %v1473_v15 = vmax.f32 %v1404_v6, 0.0 }
 0x1d0   : > { %v1487_v57 = vmax.f32 %v1320_v50, 0.0 }
 0x1d1   : > { %v1374_v46 = vpop.f32.mrf.mxu3 }
 0x1d2   : > { %v1375_v17 = vadd.f32 %v1374_v46, %v2934_v20 }
 0x1d3   : > { %v1348_v47 = vpop.f32.mrf.mxu2 }
 0x1d4   : > { %v1406_v48 = vpop.f32.mrf.mxu0  ;;  %v1349_v61 = vadd.f32 %v1348_v47, %v2928_v13  ;;  %v1472_v23 = vmax.f32 %v1375_v17, 0.0 }
 0x1d5   : > { %v1322_v49 = vpop.f32.mrf.mxu1  ;;  %v1407_v0 = vadd.f32 %v1406_v48, %v2928_v13 }
 0x1d6   : > { %v1323_v51 = vadd.f32 %v1322_v49, %v2932_v54  ;;  %v1488_v34 = vmax.f32 %v1349_v61, 0.0 }
 0x1d7   : > { %v1490_v7 = vmax.f32 %v1407_v0, 0.0 }
 0x1d8   : > { %v1504_v53 = vmax.f32 %v1323_v51, 0.0 }
 0x1d9   : > { %v1377_v55 = vpop.f32.mrf.mxu3 }
 0x1da   : > { %2226 = vmatpush.msk.msra.mxu3 %vm1520_vm3, %v1504_v53  ;;  %v1378_v11 = vadd.f32 %v1377_v55, %v2928_v13 }
 0x1db   : > { %v1351_v58 = vpop.f32.mrf.mxu2 }
 0x1dc   : > { %v1409_v59 = vpop.f32.mrf.mxu0  ;;  %v1352_v62 = vadd.f32 %v1351_v58, %v2932_v54  ;;  %1825 = vmatpush.msra.mxu3 %v1487_v57  ;;  %v1489_v22 = vmax.f32 %v1378_v11, 0.0 }
 0x1dd   : > { %v1410_v63 = vadd.f32 %v1409_v59, %v2932_v54  ;;  %v1429_v1 = vpop.f32.mrf.mxu1 }
 0x1de   : > { %v1505_v4 = vmax.f32 %v1352_v62, 0.0  ;;  %1826 = vmatpush.msra.mxu3 %v1470_v60  ;;  %v1430_v32 = vadd.f32 %v1429_v1, %v2941_v14 }
 0x1df   : > { %v1507_v5 = vmax.f32 %v1410_v63, 0.0 }
 0x1e0   : > { %1827 = vmatpush.msra.mxu3 %v1453_v2  ;;  %2228 = vmatpush.msk.msrb.mxu0 %vm1520_vm3, %v1505_v4  ;;  %v1457_v36 = vmax.f32 %v1430_v32, 0.0 }
 0x1e1   : > { %2232 = vmatpush.msk.msrb.mxu2 %vm1520_vm3, %v1507_v5  ;;  %v1380_v9 = vpop.f32.mrf.mxu3  ;;  %2227 = vmatmul.msk.f32.vlgmr.msra.gmra.mxu3 %vm1516_vm4, %v2951_v39 }
 0x1e2   : > { %v1381_v12 = vadd.f32 %v1380_v9, %v2932_v54  ;;  %1845 = vmatpush.msrb.mxu0 %v1488_v34 }
 0x1e3   : > { %1885 = vmatpush.msrb.mxu2 %v1490_v7 }
 0x1e4   : > { %v1506_v18 = vmax.f32 %v1381_v12, 0.0  ;;  %1846 = vmatpush.msrb.mxu0 %v1471_v10 }
 0x1e5   : > { %1886 = vmatpush.msrb.mxu2 %v1473_v15  ;;  %v1432_v21 = vpop.f32.mrf.mxu1 }
 0x1e6   : > { %1847 = vmatpush.msrb.mxu0 %v1454_v16  ;;  %2230 = vmatpush.msk.msra.mxu1 %vm1520_vm3, %v1506_v18  ;;  %v1433_v30 = vadd.f32 %v1432_v21, %v2934_v20 }
 0x1e7   : > { %1887 = vmatpush.msrb.mxu2 %v1456_v19  ;;  %2229 = vmatmul.msk.f32.vlgmr.msrb.gmra.mxu0 %vm1516_vm4, %v2951_v39 }
 0x1e8   : > { %2233 = vmatmul.msk.f32.vlgmr.msrb.gmra.mxu2 %vm1516_vm4, %v2951_v39  ;;  %1865 = vmatpush.msra.mxu1 %v1489_v22  ;;  %v1474_v33 = vmax.f32 %v1433_v30, 0.0 }
 0x1ea   : > { %1866 = vmatpush.msra.mxu1 %v1472_v23 }
 0x1ec   : > { %1867 = vmatpush.msra.mxu1 %v1455_v24 }
 0x1ed   : > { %v1435_v25 = vpop.f32.mrf.mxu1  ;;  %2231 = vmatmul.msk.f32.vlgmr.msra.gmra.mxu1 %vm1516_vm4, %v2951_v39 }
 0x1ee   : > { %v1436_v27 = vadd.f32 %v1435_v25, %v2928_v13 }
 0x1f0   : > { %v1491_v40 = vmax.f32 %v1436_v27, 0.0 }
 0x1f5   : > { %v1438_v26 = vpop.f32.mrf.mxu1 }
 0x1f6   : > { %v1439_v28 = vadd.f32 %v1438_v26, %v2932_v54  ;;  %v3071_v54 = vpop.permute.xlu1 %1513 }
 0x1f8   : > { %v1508_v31 = vmax.f32 %v1439_v28, 0.0 }
 0x1fa   : > { %2234 = vmatpush.msk.msrb.mxu3 %vm1520_vm3, %v1508_v31 }
 0x1fc   : > { %1905 = vmatpush.msrb.mxu3 %v1491_v40 }
 0x1fe   : > { %1906 = vmatpush.msrb.mxu3 %v1474_v33 }
 0x200   : > { %1907 = vmatpush.msrb.mxu3 %v1457_v36 }
 0x201   : > { %2235 = vmatmul.msk.f32.vlgmr.msrb.gmra.mxu3 %vm1516_vm4, %v2951_v39 }
 0x204   : > { %v1589_v13 = vpop.f32.mrf.mxu2 }
 0x205   : > { %v1590_v44 = vadd.f32 %v1589_v13, %v3071_v54 }
 0x20a   : > { %v1609_v37 = vpop.f32.mrf.mxu3 }
 0x20b   : > { %v1610_v20 = vadd.f32 %v1609_v37, %v3071_v54 }
 0x20d   : > { %v1928_v42 = vrot.slane %v1610_v20, 6 }
 0x20f   : > { %v1941_v46 = vsel %vm1940_vm5, %v1590_v44, %v1928_v42 }
 0x210   : > { %v1629_v38 = vpop.f32.mrf.mxu2 }
 0x211   : > { %v1630_v14 = vadd.f32 %v1629_v38, %v3071_v54 }
 0x212   : > { %v1649_v41 = vpop.f32.mrf.mxu3 }
 0x213   : > { %v1650_v43 = vadd.f32 %v1649_v41, %v3071_v54  ;;  %v1929_v45 = vrot.slane %v1630_v14, 4 }
 0x215   : > { %v1930_v39 = vrot.slane %v1650_v43, 2 }
 0x217   : > { %v1943_v47 = vsel %vm1942_vm6, %v1929_v45, %v1930_v39 }
 0x218   : > { %v1944_v48 = vsel %vm896_vm1, %v1941_v46, %v1943_v47 }
 0x219   : > { %1958 = vst [vmem:[%s3081_s11] sm:$0xff] %v1944_v48 }
 0x224   : > { %v1669_v49 = vpop.f32.mrf.mxu2 }
 0x225   : > { %v1670_v58 = vadd.f32 %v1669_v49, %v3071_v54 }
 0x22a   : > { %v1689_v50 = vpop.f32.mrf.mxu3 }
 0x22b   : > { %v1690_v51 = vadd.f32 %v1689_v50, %v3071_v54  ;;  %v1709_v52 = vpop.f32.mrf.mxu0 }
 0x22c   : > { %v1710_v53 = vadd.f32 %v1709_v52, %v3071_v54  ;;  %v1729_v55 = vpop.f32.mrf.mxu2 }
 0x22d   : > { %v1931_v56 = vrot.slane %v1690_v51, 6  ;;  %v1730_v57 = vadd.f32 %v1729_v55, %v3071_v54 }
 0x22e   : > { %v1932_v59 = vrot.slane %v1710_v53, 4 }
 0x22f   : > { %v1933_v60 = vrot.slane %v1730_v57, 2  ;;  %v1945_v61 = vsel %vm1940_vm5, %v1670_v58, %v1931_v56 }
 0x231   : > { %v1946_v62 = vsel %vm1942_vm6, %v1932_v59, %v1933_v60 }
 0x232   : > { %v1947_v63 = vsel %vm896_vm1, %v1945_v61, %v1946_v62 }
 0x233   : > { %1959 = vst [vmem:[%s3081_s11 + $0x8] sm:$0xff] %v1947_v63 }
 0x244   : > { %v1769_v0 = vpop.f32.mrf.mxu0  ;;  %v1749_v3 = vpop.f32.mrf.mxu3 }
 0x245   : > { %v1770_v1 = vadd.f32 %v1769_v0, %v3071_v54  ;;  %v1750_v35 = vadd.f32 %v1749_v3, %v3071_v54 }
 0x247   : > { %v1934_v6 = vrot.slane %v1770_v1, 6 }
 0x249   : > { %v1948_v9 = vsel %vm1940_vm5, %v1750_v35, %v1934_v6 }
 0x24a   : > { %v1789_v2 = vpop.f32.mrf.mxu1 }
 0x24b   : > { %v1790_v4 = vadd.f32 %v1789_v2, %v3071_v54  ;;  %v1809_v5 = vpop.f32.mrf.mxu2 }
 0x24c   : > { %v1810_v29 = vadd.f32 %v1809_v5, %v3071_v54 }
 0x24d   : > { %v1935_v34 = vrot.slane %v1790_v4, 4 }
 0x24e   : > { %v1936_v7 = vrot.slane %v1810_v29, 2 }
 0x250   : > { %v1949_v10 = vsel %vm1942_vm6, %v1935_v34, %v1936_v7 }
 0x251   : > { %v1950_v11 = vsel %vm896_vm1, %v1948_v9, %v1949_v10 }
 0x252   : > { %1960 = vst [vmem:[%s3081_s11 + $0x10] sm:$0xff] %v1950_v11 }
 0x264   : > { %v1849_v12 = vpop.f32.mrf.mxu0  ;;  %v1829_v17 = vpop.f32.mrf.mxu3 }
 0x265   : > { %v1850_v15 = vadd.f32 %v1849_v12, %v3071_v54  ;;  %v1830_v23 = vadd.f32 %v1829_v17, %v3071_v54 }
 0x267   : > { %v1937_v21 = vrot.slane %v1850_v15, 6 }
 0x269   : > { %v1951_v25 = vsel %vm1940_vm5, %v1830_v23, %v1937_v21 }
 0x26a   : > { %v1869_v16 = vpop.f32.mrf.mxu1 }
 0x26b   : > { %v1870_v18 = vadd.f32 %v1869_v16, %v3071_v54  ;;  %v1889_v19 = vpop.f32.mrf.mxu2 }
 0x26c   : > { %v1890_v8 = vadd.f32 %v1889_v19, %v3071_v54 }
 0x26d   : > { %v1938_v22 = vrot.slane %v1870_v18, 4 }
 0x26e   : > { %v1939_v24 = vrot.slane %v1890_v8, 2 }
 0x270   : > { %v1952_v26 = vsel %vm1942_vm6, %v1938_v22, %v1939_v24 }
 0x271   : > { %v1953_v27 = vsel %vm896_vm1, %v1951_v25, %v1952_v26 }
 0x272   : > { %1961 = vst [vmem:[%s3081_s11 + $0x18] sm:$0xff] %v1953_v27 }
 0x283   : > { %1970 = sbr.rel (!%p2496_p9) target bundleno = 678 (0x2a6), region = 56 }
 0x284   : > { %v1909_v28 = vpop.f32.mrf.mxu3 }
 0x285   : > { %v1910_v30 = vadd.f32 %v1909_v28, %v3071_v54 }
 0x287   : > { %1962 = vst [vmem:[%s3081_s11 + $0x20] sm:$0x3] %v1910_v30 }
 0x288   : > { %s3201_s21 = smov (!%p1973_p6, %s1972_s21), 17 }
 0x289   : > { %s2236_s8 = sshll.u32 %s3201_s21, 1 }
 0x28a   : > { %s1976_s9 = ssub.s32 34, %s2236_s8 }
 0x28b   : > { %s1977_s16 = sshll.u32 %s1976_s9, 4 }
 0x28c   : > { %1978 = vsyncadd %s1964_s17, %s1977_s16  ;;  %p3119_p11 = scmp.ne.s32.totalorder %s2236_s8, 0  ;;  %s2244_s18 = smul.u32 34, %s2473_s28 }
 0x28d   : > { %s2240_s20 = sshll.u32 %s3201_s21, 5  ;;  %s1984_s22 = sshll.u32 %s3081_s11, 4  ;;  %s3129_s22 = int_to_ptr.vmem [resolvable:$true] %s1984_s22 }
 0x28e   : > { %s1981_s15 = scalar_lea.hbm %s3176_s7, %s2244_s18  ;;  %s2330_s14 = sshra.s32 %s3129_s22, 4  ;;  %s2331_s14 = int_to_ptr.vmem [resolvable:$true] %s2330_s14 }
 0x28f   : > { %s1986_s26 = sshll.u32 %s1981_s15, 4  ;;  %s2332_s13 = sshrl.u32 %s2240_s20, 4  ;;  %s1987_s26 = int_to_ptr.hbm [resolvable:$true] %s1986_s26 }
 0x290   : > { %s2337_s23 = scalar_lea.vmem %s2331_s14, %s2332_s13  ;;  %s2411_s28 = smov [#allocation5]  }
 0x291   : > { %p2338_p9 = scmp.ne.s32.totalorder %s2331_s14, %s2337_s23  ;;  %s2341_s11 = scalar_lea.vmem %s2411_s28, 68 }
 0x292   : > { %p2343_p7 = scmp.lt.s32.totalorder %s2341_s11, %s2337_s23 }
 0x293   : > { %p2339_p13 = pnand %p2338_p9, %p3119_p11 }
 0x295   : > { %p2340_p5 = pneg %p2339_p13 }
 0x297   : > { %p2345_p8 = pnand %p2343_p7, %p2340_p5 }
 0x299   : > { %2348 = shalt.err (!%p2345_p8)
}
 0x29a   : > { %s2349_s19 = sshra.s32 %s1987_s26, 4  ;;  %s2360_s18 = scalar_lea.hbm %s3176_s7, 66  ;;  %s2350_s19 = int_to_ptr.hbm [resolvable:$true] %s2349_s19 }
 0x29b   : > { %s2356_s8 = scalar_lea.hbm %s2350_s19, %s2332_s13  ;;  %p2361_p2 = scmp.lt.s32.totalorder %s2350_s19, %s3176_s7 }
 0x29c   : > { %p2357_p12 = scmp.ne.s32.totalorder %s2350_s19, %s2356_s8  ;;  %p2362_p3 = scmp.lt.s32.totalorder %s2360_s18, %s2356_s8 }
 0x29e   : > { %p2358_p0 = pnand %p2357_p12, %p3119_p11  ;;  %p2363_p4 = por %p2362_p3, %p2361_p2 }
 0x2a0   : > { %p2359_p1 = pneg %p2358_p0 }
 0x2a2   : > { %p2364_p6 = pnand %p2363_p4, %p2359_p1 }
 0x2a4   : > { %2367 = shalt.err (!%p2364_p6)
}
 0x2a5   : > { %1989 = dma.vmem_to_hbm [thread:$0]  (%p3119_p11), %s3129_s22, %s2240_s20, %s1987_s26, %s1964_s17  }
 0x2a6 PF: > { %s1998_s14 = sand.u32 1, %s2395_s24   ;;  %p3192_p9 = scmp.ge.s32.totalorder %s2407_s27, 2 }
 0x2a7   : > { %s1999_s13 = scalar_lea.sflag [#allocation4], %s1998_s14 }
 0x2a8   : > { %p2251_p13 = pnand %p3192_p9, %p2500_p10 }
 0x2aa   : > { %p2252_p5 = pneg %p2251_p13 }
 0x2ac   : > { %2390 = dma.done.wait (%p2252_p5), %s1999_s13, 544  }
 0x2ad   : > { %2392 = vsyncadd (%p2252_p5), %s1999_s13, 4294966752  ;;  %s3193_s27 = sld [smem:[#allocation9_spill]]  ;;  %s3196_s24 = smov %s2399_s25 }
 0x2ae   : > { %s3194_s30 = sld [smem:[#allocation8_spill]] }
 0x2af   : > { %s3195_s26 = sld [smem:[#allocation10_spill]] }
 0x2b3   : > { %p20_p7 = scmp.ge.s32.totalorder %s3193_s27, 4  }
 0x2b4   : > { %s3197_s25 = smov %s3194_s30 }
 0x2b5   :  { %22 = sbr.rel (!%p20_p7) target bundleno = 5 (0x5), region = 93 }
 0x2ba   :  { %2005 = vsyncpa [#allocation3], 1 }
 0x2bb   :  { %2007 = vsyncpa [#allocation3 + $0x1], 1 }
 0x2bc   :  { %2008 = vsyncpa [#allocation4], 1 }
 0x2bd   :  { %2010 = vsyncpa [#allocation4 + $0x1], 1 }

</bundles_post_ra>
